<compile_context>
chip_gen: v6e
topology: v6e:2x2x1
jax: 0.10.0
libtpu: 0.0.40
codegen_flags: <defaults>
</compile_context>

<pallas_src>
import numpy as np

import jax
import jax.numpy as jnp
from jax.experimental import pallas as pl
from jax.experimental.pallas import tpu as pltpu


_VMEM = pl.BlockSpec(memory_space=pltpu.MemorySpace.VMEM)


# ------------------------------ fused kernel --------------------------------

def _lenet_fused_kernel(slab1_ref, bb1_ref, b1_ref, s1_ref, r1_ref,
                        bb2_ref, b2_ref, s2_ref, r2_ref,
                        w1_ref, fb1_ref, w2_ref, fb2_ref, w3_ref, fb3_ref,
                        o_ref):
    f32 = jnp.float32

    def mm(a, b):
        return jnp.dot(a, b, preferred_element_type=f32)

    def elu(y):  # ELU(alpha=1); exp(min(y,0)) keeps the exp argument bounded
        return jnp.where(y > 0.0, y, jnp.exp(jnp.minimum(y, 0.0)) - 1.0)

    def tree_sum(terms):  # balanced tree so VPU adds are not one serial chain
        while len(terms) > 1:
            nxt = [terms[i] + terms[i + 1] for i in range(0, len(terms) - 1, 2)]
            if len(terms) % 2:
                nxt.append(terms[-1])
            terms = nxt
        return terms[0]

    def pool2x2(y, s_ref, r_ref):
        # y: [B*Ho, Wo*O]; s_ref: [2, Wo*O, (Wo/2)*O] column-pair selectors
        # (batch independent); r_ref: [2, B*Ho/2, B*Ho] row-pair selectors
        # built offline for the batch-interleaved row ordering.
        cmax = jnp.maximum(mm(y, s_ref[0]), mm(y, s_ref[1]))
        return jnp.maximum(mm(r_ref[0], cmax), mm(r_ref[1], cmax))

    B = o_ref.shape[0]

    # ---- conv1 + ELU: ONE batched matmul against the row-stacked banded W ---
    y1 = elu(mm(slab1_ref[...], bb1_ref[...]) + b1_ref[...])        # [B*24, 144]
    p1 = pool2x2(y1, s1_ref, r1_ref)                                 # [B*12, 72]

    # ---- conv2 + ELU: 5 banded matmuls on contiguous row slices, tree sum ---
    ho2 = p1.shape[0] // B - 4                                       # = 8
    terms = [mm(p1[kh * B:(kh + ho2) * B, :], bb2_ref[kh]) for kh in range(5)]
    y2 = elu(tree_sum(terms) + b2_ref[...])                          # [B*8, 128]
    p2 = pool2x2(y2, s2_ref, r2_ref)                                 # [B*4, 64]

    # ---- fc1 without materializing the flatten: 4 contiguous h-band matmuls
    # (fc1 weight rows were permuted offline to the torch NCHW flatten order).
    w1 = w1_ref[...]
    cw = p2.shape[1]                                                 # = 64
    bands = [mm(p2[h * B:(h + 1) * B, :], w1[h * cw:(h + 1) * cw, :])
             for h in range(4)]
    h1 = elu(tree_sum(bands) + fb1_ref[...])                         # [B, 120]
    h2 = elu(mm(h1, w2_ref[...]) + fb2_ref[...])                     # [B, 84]
    logits = mm(h2, w3_ref[...]) + fb3_ref[...]                      # [B, 3]

    # ---- softmax over dim=0 (the batch axis), as in F.softmax(x, dim=0) -----
    m = jnp.max(logits, axis=0, keepdims=True)
    e = jnp.exp(logits - m)
    denom = jnp.sum(e, axis=0, keepdims=True)
    o_ref[...] = e / denom                                           # one store


# ------------------------- offline weight preparation ------------------------

def _banded_conv_weight(w_oihw, b_o, w_in):
    """Conv weight [O,Cin,k,k] -> (BB [k, w_in*Cin, Wo*O], bias_row [1, Wo*O]).

    With activations laid out [rows, W*Cin] (channel minor), the valid conv is
    sum_kh  slab_kh @ BB[kh]  where slab_kh holds the input rows i+kh.  The
    formula is row-order agnostic, so it works for the batch-interleaved rows.
    """
    w = np.asarray(w_oihw, np.float32)
    O, Cin, k, _ = w.shape
    wo = w_in - k + 1
    bb = np.zeros((k, w_in * Cin, wo * O), np.float32)
    for kh in range(k):
        for kw in range(k):
            wk = w[:, :, kh, kw].T                      # [Cin, O]
            for j in range(wo):
                jp = j + kw
                bb[kh, jp * Cin:(jp + 1) * Cin, j * O:(j + 1) * O] = wk
    bias_row = np.tile(np.asarray(b_o, np.float32), wo).reshape(1, wo * O)
    return bb, bias_row


def _pool_selectors(ho, wo, o, batch):
    """0/1 matrices so that a batched 2x2 max-pool = max of 4 matmul results.

    Column selectors act on lanes (w*O + ch, channel minor, batch independent);
    row selectors are built for the batch-interleaved order (row = i*B + b).
    """
    s = np.zeros((2, wo * o, (wo // 2) * o), np.float32)
    for dj in range(2):
        for v in range(wo // 2):
            for ch in range(o):
                s[dj, (2 * v + dj) * o + ch, v * o + ch] = 1.0
    r = np.zeros((2, (ho // 2) * batch, ho * batch), np.float32)
    for di in range(2):
        for u in range(ho // 2):
            for b in range(batch):
                r[di, u * batch + b, (2 * u + di) * batch + b] = 1.0
    return s, r


def _fc1_row_permutation():
    """Map our flatten order g=(h,w,c) -> torch flatten order f=c*16+h*4+w."""
    g2f = np.zeros(256, np.int64)
    for h in range(4):
        for w in range(4):
            for c in range(16):
                g2f[h * 64 + w * 16 + c] = c * 16 + h * 4 + w
    return g2f


def prepare_params(params, batch):
    """One-time preprocessing of PyTorch-layout params into kernel constants."""
    bb1, b1t = _banded_conv_weight(params["conv1_w"], params["conv1_b"], 28)
    bb2, b2t = _banded_conv_weight(params["conv2_w"], params["conv2_b"], 12)
    s1, r1 = _pool_selectors(24, 24, 6, batch)
    s2, r2 = _pool_selectors(8, 8, 16, batch)
    fc1_w_perm = np.asarray(params["fc1_w"], np.float32)[_fc1_row_permutation(), :]
    # conv1 runs as a single matmul against the row-stacked banded weight;
    # conv2 keeps its per-band [k, W*Cin, Wo*O] layout (tree-summed in kernel).
    bb1_full = bb1.reshape(-1, bb1.shape[-1])            # [5*28, 144]
    # NOTE: bf16 weight casting (v5e-specific review item) intentionally not
    # applied: this kernel is latency- not bandwidth-bound and f32 keeps the
    # 2e-3 reference comparison safe.
    return {
        "bb1": jnp.asarray(bb1_full), "b1t": jnp.asarray(b1t),
        "s1": jnp.asarray(s1), "r1": jnp.asarray(r1),
        "bb2": jnp.asarray(bb2), "b2t": jnp.asarray(b2t),
        "s2": jnp.asarray(s2), "r2": jnp.asarray(r2),
        "fc1_w": jnp.asarray(fc1_w_perm), "fc1_b": jnp.asarray(params["fc1_b"]),
        "fc2_w": jnp.asarray(params["fc2_w"]), "fc2_b": jnp.asarray(params["fc2_b"]),
        "fc3_w": jnp.asarray(params["fc3_w"]), "fc3_b": jnp.asarray(params["fc3_b"]),
    }


# ------------------------------ model forward --------------------------------

@jax.jit
def model_forward(x_nchw, prep):
    B = x_nchw.shape[0]
    H, W = x_nchw.shape[2], x_nchw.shape[3]
    # NCHW with C==1 -> [B, 28, 28] -> batch-interleaved rows [28*B, 28]
    # (row = image_row * B + sample).  Pure layout plumbing done by XLA.
    x = x_nchw.astype(jnp.float32).reshape(B, H, W)
    x_il = jnp.transpose(x, (1, 0, 2)).reshape(H * B, W)
    # conv1 im2col slab: 5 contiguous row blocks (one per kernel row) placed
    # side by side along lanes -> the first conv is ONE MXU matmul in-kernel.
    ho1 = H - 4
    slab1 = jnp.concatenate(
        [x_il[kh * B:(kh + ho1) * B, :] for kh in range(5)], axis=1)  # [B*24,140]
    return pl.pallas_call(
        _lenet_fused_kernel,
        out_shape=jax.ShapeDtypeStruct((B, 3), jnp.float32),
        in_specs=[_VMEM] * 15,
        out_specs=_VMEM,
    )(slab1,
      prep["bb1"], prep["b1t"], prep["s1"], prep["r1"],
      prep["bb2"], prep["b2t"], prep["s2"], prep["r2"],
      prep["fc1_w"], prep["fc1_b"], prep["fc2_w"], prep["fc2_b"],
      prep["fc3_w"], prep["fc3_b"])


# ----------------------------- pure-JAX reference ----------------------------

def reference_forward(x_nchw, params):
    def elu(y):
        return jnp.where(y > 0.0, y, jnp.exp(jnp.minimum(y, 0.0)) - 1.0)

    def conv(x, w, b):
        y = jax.lax.conv_general_dilated(
            x, w, window_strides=(1, 1), padding="VALID",
            dimension_numbers=("NCHW", "OIHW", "NCHW"),
            precision=jax.lax.Precision.HIGHEST)
        return y + b.reshape(1, -1, 1, 1)

    def pool(x):
        return jax.lax.reduce_window(x, -jnp.inf, jax.lax.max,
                                     (1, 1, 2, 2), (1, 1, 2, 2), "VALID")

    dot = lambda a, b: jnp.dot(a, b, precision=jax.lax.Precision.HIGHEST)

    x = x_nchw.astype(jnp.float32)
    x = pool(elu(conv(x, params["conv1_w"], params["conv1_b"])))
    x = pool(elu(conv(x, params["conv2_w"], params["conv2_b"])))
    B = x.shape[0]
    x = x.reshape(B, -1)                       # torch.flatten(x, 1) on NCHW
    x = elu(dot(x, params["fc1_w"]) + params["fc1_b"])
    x = elu(dot(x, params["fc2_w"]) + params["fc2_b"])
    x = dot(x, params["fc3_w"]) + params["fc3_b"]
    return jax.nn.softmax(x, axis=0)


# ------------------------------ parameter init -------------------------------

def init_params(key):
    """PyTorch-style default init, PyTorch layouts (fc weights stored [in,out])."""
    def uniform(k, shape, fan_in):
        bound = 1.0 / jnp.sqrt(jnp.float32(fan_in))
        return jax.random.uniform(k, shape, jnp.float32, -bound, bound)

    ks = jax.random.split(key, 10)
    return {
        "conv1_w": uniform(ks[0], (6, 1, 5, 5), 1 * 5 * 5),
        "conv1_b": uniform(ks[1], (6,), 1 * 5 * 5),
        "conv2_w": uniform(ks[2], (16, 6, 5, 5), 6 * 5 * 5),
        "conv2_b": uniform(ks[3], (16,), 6 * 5 * 5),
        "fc1_w": uniform(ks[4], (256, 120), 256),
        "fc1_b": uniform(ks[5], (1, 120), 256),
        "fc2_w": uniform(ks[6], (120, 84), 120),
        "fc2_b": uniform(ks[7], (1, 84), 120),
        "fc3_w": uniform(ks[8], (84, 3), 84),
        "fc3_b": uniform(ks[9], (1, 3), 84),
        # variable_y / mu_y / mu_x belong to the loss, not the forward pass.
        "variable_y": jnp.full((3,), 1.0 / 3.0, jnp.float32),
    }


# ----------------------------------- main -------------------------------------

if __name__ == "__main__":
    key = jax.random.PRNGKey(0)
    k_x, k_p = jax.random.split(key)

    # fc1 has in_features=256 = 16*4*4, which forces 28x28 single-channel input.
    x = jax.random.normal(k_x, (2, 1, 28, 28), jnp.float32)
    params = init_params(k_p)
    prep = prepare_params(params, batch=x.shape[0])   # one-time, off the hot path

    out = jax.block_until_ready(model_forward(x, prep))
    ref = jax.block_until_ready(reference_forward(x, params))

    assert out.shape == (2, 3)
    # softmax over dim=0: each column sums to 1.
    assert jnp.allclose(jnp.sum(out, axis=0), jnp.ones((3,)), atol=1e-5)
    # fused Pallas kernel matches the pure-JAX reference forward.
    assert jnp.allclose(out, ref, atol=2e-3, rtol=2e-3)
    print("KERNEL_OK")
</pallas_src>

<mosaic_0001>
module attributes {stable_mosaic.version = 11 : i64} {
  func.func @_lenet_fused_kernel(%arg0: memref<48x140xf32, #tpu.memory_space<vmem>>, %arg1: memref<140x144xf32, #tpu.memory_space<vmem>>, %arg2: memref<1x144xf32, #tpu.memory_space<vmem>>, %arg3: memref<2x144x72xf32, #tpu.memory_space<vmem>>, %arg4: memref<2x24x48xf32, #tpu.memory_space<vmem>>, %arg5: memref<5x72x128xf32, #tpu.memory_space<vmem>>, %arg6: memref<1x128xf32, #tpu.memory_space<vmem>>, %arg7: memref<2x128x64xf32, #tpu.memory_space<vmem>>, %arg8: memref<2x8x16xf32, #tpu.memory_space<vmem>>, %arg9: memref<256x120xf32, #tpu.memory_space<vmem>>, %arg10: memref<1x120xf32, #tpu.memory_space<vmem>>, %arg11: memref<120x84xf32, #tpu.memory_space<vmem>>, %arg12: memref<1x84xf32, #tpu.memory_space<vmem>>, %arg13: memref<84x3xf32, #tpu.memory_space<vmem>>, %arg14: memref<1x3xf32, #tpu.memory_space<vmem>>, %arg15: memref<2x3xf32, #tpu.memory_space<vmem>>) attributes {dimension_semantics = [], scalar_prefetch = 0 : i64, scratch_operands = 0 : i64, tpu.core_type = #tpu.core_type<tc>} {
    %c0 = arith.constant 0 : index
    %c0_0 = arith.constant 0 : index
    %0 = vector.load %arg0[%c0, %c0_0] : memref<48x140xf32, #tpu.memory_space<vmem>>, vector<48x140xf32>
    %c0_1 = arith.constant 0 : index
    %c0_2 = arith.constant 0 : index
    %1 = vector.load %arg1[%c0_1, %c0_2] : memref<140x144xf32, #tpu.memory_space<vmem>>, vector<140x144xf32>
    %cst = arith.constant dense<0.000000e+00> : vector<48x144xf32>
    %2 = tpu.matmul %0, %1, %cst {dimension_numbers = #tpu.dot_dimension_numbers<[1], [0], [0], [1], [0, 0, 1, 1], [], []>} : vector<48x140xf32>, vector<140x144xf32>, vector<48x144xf32> -> vector<48x144xf32>
    %c0_3 = arith.constant 0 : index
    %c0_4 = arith.constant 0 : index
    %3 = vector.load %arg2[%c0_3, %c0_4] : memref<1x144xf32, #tpu.memory_space<vmem>>, vector<1x144xf32>
    %4 = vector.broadcast %3 : vector<1x144xf32> to vector<48x144xf32>
    %5 = arith.addf %2, %4 : vector<48x144xf32>
    %cst_5 = arith.constant 0.000000e+00 : f32
    %6 = vector.broadcast %cst_5 : f32 to vector<48x144xf32>
    %7 = arith.cmpf ogt, %5, %6 : vector<48x144xf32>
    %cst_6 = arith.constant 0.000000e+00 : f32
    %8 = vector.broadcast %cst_6 : f32 to vector<48x144xf32>
    %9 = arith.minimumf %5, %8 : vector<48x144xf32>
    %10 = math.exp %9 : vector<48x144xf32>
    %cst_7 = arith.constant 1.000000e+00 : f32
    %11 = vector.broadcast %cst_7 : f32 to vector<48x144xf32>
    %12 = arith.subf %10, %11 : vector<48x144xf32>
    %13 = arith.select %7, %5, %12 : vector<48x144xi1>, vector<48x144xf32>
    %c0_8 = arith.constant 0 : index
    %c0_9 = arith.constant 0 : index
    %c0_10 = arith.constant 0 : index
    %14 = vector.load %arg3[%c0_8, %c0_9, %c0_10] : memref<2x144x72xf32, #tpu.memory_space<vmem>>, vector<1x144x72xf32>
    %15 = vector.shape_cast %14 : vector<1x144x72xf32> to vector<144x72xf32>
    %cst_11 = arith.constant dense<0.000000e+00> : vector<48x72xf32>
    %16 = tpu.matmul %13, %15, %cst_11 {dimension_numbers = #tpu.dot_dimension_numbers<[1], [0], [0], [1], [0, 0, 1, 1], [], []>} : vector<48x144xf32>, vector<144x72xf32>, vector<48x72xf32> -> vector<48x72xf32>
    %c1 = arith.constant 1 : index
    %c0_12 = arith.constant 0 : index
    %c0_13 = arith.constant 0 : index
    %17 = vector.load %arg3[%c1, %c0_12, %c0_13] : memref<2x144x72xf32, #tpu.memory_space<vmem>>, vector<1x144x72xf32>
    %18 = vector.shape_cast %17 : vector<1x144x72xf32> to vector<144x72xf32>
    %cst_14 = arith.constant dense<0.000000e+00> : vector<48x72xf32>
    %19 = tpu.matmul %13, %18, %cst_14 {dimension_numbers = #tpu.dot_dimension_numbers<[1], [0], [0], [1], [0, 0, 1, 1], [], []>} : vector<48x144xf32>, vector<144x72xf32>, vector<48x72xf32> -> vector<48x72xf32>
    %20 = arith.maximumf %16, %19 : vector<48x72xf32>
    %c0_15 = arith.constant 0 : index
    %c0_16 = arith.constant 0 : index
    %c0_17 = arith.constant 0 : index
    %21 = vector.load %arg4[%c0_15, %c0_16, %c0_17] : memref<2x24x48xf32, #tpu.memory_space<vmem>>, vector<1x24x48xf32>
    %22 = vector.shape_cast %21 : vector<1x24x48xf32> to vector<24x48xf32>
    %cst_18 = arith.constant dense<0.000000e+00> : vector<24x72xf32>
    %23 = tpu.matmul %22, %20, %cst_18 {dimension_numbers = #tpu.dot_dimension_numbers<[1], [0], [0], [1], [0, 0, 1, 1], [], []>} : vector<24x48xf32>, vector<48x72xf32>, vector<24x72xf32> -> vector<24x72xf32>
    %c1_19 = arith.constant 1 : index
    %c0_20 = arith.constant 0 : index
    %c0_21 = arith.constant 0 : index
    %24 = vector.load %arg4[%c1_19, %c0_20, %c0_21] : memref<2x24x48xf32, #tpu.memory_space<vmem>>, vector<1x24x48xf32>
    %25 = vector.shape_cast %24 : vector<1x24x48xf32> to vector<24x48xf32>
    %cst_22 = arith.constant dense<0.000000e+00> : vector<24x72xf32>
    %26 = tpu.matmul %25, %20, %cst_22 {dimension_numbers = #tpu.dot_dimension_numbers<[1], [0], [0], [1], [0, 0, 1, 1], [], []>} : vector<24x48xf32>, vector<48x72xf32>, vector<24x72xf32> -> vector<24x72xf32>
    %27 = arith.maximumf %23, %26 : vector<24x72xf32>
    %28 = vector.extract_strided_slice %27 {offsets = [0, 0], sizes = [16, 72], strides = [1, 1]} : vector<24x72xf32> to vector<16x72xf32>
    %c0_23 = arith.constant 0 : index
    %c0_24 = arith.constant 0 : index
    %c0_25 = arith.constant 0 : index
    %29 = vector.load %arg5[%c0_23, %c0_24, %c0_25] : memref<5x72x128xf32, #tpu.memory_space<vmem>>, vector<1x72x128xf32>
    %30 = vector.shape_cast %29 : vector<1x72x128xf32> to vector<72x128xf32>
    %cst_26 = arith.constant dense<0.000000e+00> : vector<16x128xf32>
    %31 = tpu.matmul %28, %30, %cst_26 {dimension_numbers = #tpu.dot_dimension_numbers<[1], [0], [0], [1], [0, 0, 1, 1], [], []>} : vector<16x72xf32>, vector<72x128xf32>, vector<16x128xf32> -> vector<16x128xf32>
    %32 = vector.extract_strided_slice %27 {offsets = [2, 0], sizes = [16, 72], strides = [1, 1]} : vector<24x72xf32> to vector<16x72xf32>
    %c1_27 = arith.constant 1 : index
    %c0_28 = arith.constant 0 : index
    %c0_29 = arith.constant 0 : index
    %33 = vector.load %arg5[%c1_27, %c0_28, %c0_29] : memref<5x72x128xf32, #tpu.memory_space<vmem>>, vector<1x72x128xf32>
    %34 = vector.shape_cast %33 : vector<1x72x128xf32> to vector<72x128xf32>
    %cst_30 = arith.constant dense<0.000000e+00> : vector<16x128xf32>
    %35 = tpu.matmul %32, %34, %cst_30 {dimension_numbers = #tpu.dot_dimension_numbers<[1], [0], [0], [1], [0, 0, 1, 1], [], []>} : vector<16x72xf32>, vector<72x128xf32>, vector<16x128xf32> -> vector<16x128xf32>
    %36 = vector.extract_strided_slice %27 {offsets = [4, 0], sizes = [16, 72], strides = [1, 1]} : vector<24x72xf32> to vector<16x72xf32>
    %c2 = arith.constant 2 : index
    %c0_31 = arith.constant 0 : index
    %c0_32 = arith.constant 0 : index
    %37 = vector.load %arg5[%c2, %c0_31, %c0_32] : memref<5x72x128xf32, #tpu.memory_space<vmem>>, vector<1x72x128xf32>
    %38 = vector.shape_cast %37 : vector<1x72x128xf32> to vector<72x128xf32>
    %cst_33 = arith.constant dense<0.000000e+00> : vector<16x128xf32>
    %39 = tpu.matmul %36, %38, %cst_33 {dimension_numbers = #tpu.dot_dimension_numbers<[1], [0], [0], [1], [0, 0, 1, 1], [], []>} : vector<16x72xf32>, vector<72x128xf32>, vector<16x128xf32> -> vector<16x128xf32>
    %40 = vector.extract_strided_slice %27 {offsets = [6, 0], sizes = [16, 72], strides = [1, 1]} : vector<24x72xf32> to vector<16x72xf32>
    %c3 = arith.constant 3 : index
    %c0_34 = arith.constant 0 : index
    %c0_35 = arith.constant 0 : index
    %41 = vector.load %arg5[%c3, %c0_34, %c0_35] : memref<5x72x128xf32, #tpu.memory_space<vmem>>, vector<1x72x128xf32>
    %42 = vector.shape_cast %41 : vector<1x72x128xf32> to vector<72x128xf32>
    %cst_36 = arith.constant dense<0.000000e+00> : vector<16x128xf32>
    %43 = tpu.matmul %40, %42, %cst_36 {dimension_numbers = #tpu.dot_dimension_numbers<[1], [0], [0], [1], [0, 0, 1, 1], [], []>} : vector<16x72xf32>, vector<72x128xf32>, vector<16x128xf32> -> vector<16x128xf32>
    %44 = vector.extract_strided_slice %27 {offsets = [8, 0], sizes = [16, 72], strides = [1, 1]} : vector<24x72xf32> to vector<16x72xf32>
    %c4 = arith.constant 4 : index
    %c0_37 = arith.constant 0 : index
    %c0_38 = arith.constant 0 : index
    %45 = vector.load %arg5[%c4, %c0_37, %c0_38] : memref<5x72x128xf32, #tpu.memory_space<vmem>>, vector<1x72x128xf32>
    %46 = vector.shape_cast %45 : vector<1x72x128xf32> to vector<72x128xf32>
    %cst_39 = arith.constant dense<0.000000e+00> : vector<16x128xf32>
    %47 = tpu.matmul %44, %46, %cst_39 {dimension_numbers = #tpu.dot_dimension_numbers<[1], [0], [0], [1], [0, 0, 1, 1], [], []>} : vector<16x72xf32>, vector<72x128xf32>, vector<16x128xf32> -> vector<16x128xf32>
    %48 = arith.addf %31, %35 : vector<16x128xf32>
    %49 = arith.addf %39, %43 : vector<16x128xf32>
    %50 = arith.addf %48, %49 : vector<16x128xf32>
    %51 = arith.addf %50, %47 : vector<16x128xf32>
    %c0_40 = arith.constant 0 : index
    %c0_41 = arith.constant 0 : index
    %52 = vector.load %arg6[%c0_40, %c0_41] : memref<1x128xf32, #tpu.memory_space<vmem>>, vector<1x128xf32>
    %53 = vector.broadcast %52 : vector<1x128xf32> to vector<16x128xf32>
    %54 = arith.addf %51, %53 : vector<16x128xf32>
    %cst_42 = arith.constant 0.000000e+00 : f32
    %55 = vector.broadcast %cst_42 : f32 to vector<16x128xf32>
    %56 = arith.cmpf ogt, %54, %55 : vector<16x128xf32>
    %cst_43 = arith.constant 0.000000e+00 : f32
    %57 = vector.broadcast %cst_43 : f32 to vector<16x128xf32>
    %58 = arith.minimumf %54, %57 : vector<16x128xf32>
    %59 = math.exp %58 : vector<16x128xf32>
    %cst_44 = arith.constant 1.000000e+00 : f32
    %60 = vector.broadcast %cst_44 : f32 to vector<16x128xf32>
    %61 = arith.subf %59, %60 : vector<16x128xf32>
    %62 = arith.select %56, %54, %61 : vector<16x128xi1>, vector<16x128xf32>
    %c0_45 = arith.constant 0 : index
    %c0_46 = arith.constant 0 : index
    %c0_47 = arith.constant 0 : index
    %63 = vector.load %arg7[%c0_45, %c0_46, %c0_47] : memref<2x128x64xf32, #tpu.memory_space<vmem>>, vector<1x128x64xf32>
    %64 = vector.shape_cast %63 : vector<1x128x64xf32> to vector<128x64xf32>
    %cst_48 = arith.constant dense<0.000000e+00> : vector<16x64xf32>
    %65 = tpu.matmul %62, %64, %cst_48 {dimension_numbers = #tpu.dot_dimension_numbers<[1], [0], [0], [1], [0, 0, 1, 1], [], []>} : vector<16x128xf32>, vector<128x64xf32>, vector<16x64xf32> -> vector<16x64xf32>
    %c1_49 = arith.constant 1 : index
    %c0_50 = arith.constant 0 : index
    %c0_51 = arith.constant 0 : index
    %66 = vector.load %arg7[%c1_49, %c0_50, %c0_51] : memref<2x128x64xf32, #tpu.memory_space<vmem>>, vector<1x128x64xf32>
    %67 = vector.shape_cast %66 : vector<1x128x64xf32> to vector<128x64xf32>
    %cst_52 = arith.constant dense<0.000000e+00> : vector<16x64xf32>
    %68 = tpu.matmul %62, %67, %cst_52 {dimension_numbers = #tpu.dot_dimension_numbers<[1], [0], [0], [1], [0, 0, 1, 1], [], []>} : vector<16x128xf32>, vector<128x64xf32>, vector<16x64xf32> -> vector<16x64xf32>
    %69 = arith.maximumf %65, %68 : vector<16x64xf32>
    %c0_53 = arith.constant 0 : index
    %c0_54 = arith.constant 0 : index
    %c0_55 = arith.constant 0 : index
    %70 = vector.load %arg8[%c0_53, %c0_54, %c0_55] : memref<2x8x16xf32, #tpu.memory_space<vmem>>, vector<1x8x16xf32>
    %71 = vector.shape_cast %70 : vector<1x8x16xf32> to vector<8x16xf32>
    %cst_56 = arith.constant dense<0.000000e+00> : vector<8x64xf32>
    %72 = tpu.matmul %71, %69, %cst_56 {dimension_numbers = #tpu.dot_dimension_numbers<[1], [0], [0], [1], [0, 0, 1, 1], [], []>} : vector<8x16xf32>, vector<16x64xf32>, vector<8x64xf32> -> vector<8x64xf32>
    %c1_57 = arith.constant 1 : index
    %c0_58 = arith.constant 0 : index
    %c0_59 = arith.constant 0 : index
    %73 = vector.load %arg8[%c1_57, %c0_58, %c0_59] : memref<2x8x16xf32, #tpu.memory_space<vmem>>, vector<1x8x16xf32>
    %74 = vector.shape_cast %73 : vector<1x8x16xf32> to vector<8x16xf32>
    %cst_60 = arith.constant dense<0.000000e+00> : vector<8x64xf32>
    %75 = tpu.matmul %74, %69, %cst_60 {dimension_numbers = #tpu.dot_dimension_numbers<[1], [0], [0], [1], [0, 0, 1, 1], [], []>} : vector<8x16xf32>, vector<16x64xf32>, vector<8x64xf32> -> vector<8x64xf32>
    %76 = arith.maximumf %72, %75 : vector<8x64xf32>
    %c0_61 = arith.constant 0 : index
    %c0_62 = arith.constant 0 : index
    %77 = vector.load %arg9[%c0_61, %c0_62] : memref<256x120xf32, #tpu.memory_space<vmem>>, vector<256x120xf32>
    %78 = vector.extract_strided_slice %76 {offsets = [0, 0], sizes = [2, 64], strides = [1, 1]} : vector<8x64xf32> to vector<2x64xf32>
    %79 = vector.extract_strided_slice %77 {offsets = [0, 0], sizes = [64, 120], strides = [1, 1]} : vector<256x120xf32> to vector<64x120xf32>
    %cst_63 = arith.constant dense<0.000000e+00> : vector<2x120xf32>
    %80 = tpu.matmul %78, %79, %cst_63 {dimension_numbers = #tpu.dot_dimension_numbers<[1], [0], [0], [1], [0, 0, 1, 1], [], []>} : vector<2x64xf32>, vector<64x120xf32>, vector<2x120xf32> -> vector<2x120xf32>
    %81 = vector.extract_strided_slice %76 {offsets = [2, 0], sizes = [2, 64], strides = [1, 1]} : vector<8x64xf32> to vector<2x64xf32>
    %82 = vector.extract_strided_slice %77 {offsets = [64, 0], sizes = [64, 120], strides = [1, 1]} : vector<256x120xf32> to vector<64x120xf32>
    %cst_64 = arith.constant dense<0.000000e+00> : vector<2x120xf32>
    %83 = tpu.matmul %81, %82, %cst_64 {dimension_numbers = #tpu.dot_dimension_numbers<[1], [0], [0], [1], [0, 0, 1, 1], [], []>} : vector<2x64xf32>, vector<64x120xf32>, vector<2x120xf32> -> vector<2x120xf32>
    %84 = vector.extract_strided_slice %76 {offsets = [4, 0], sizes = [2, 64], strides = [1, 1]} : vector<8x64xf32> to vector<2x64xf32>
    %85 = vector.extract_strided_slice %77 {offsets = [128, 0], sizes = [64, 120], strides = [1, 1]} : vector<256x120xf32> to vector<64x120xf32>
    %cst_65 = arith.constant dense<0.000000e+00> : vector<2x120xf32>
    %86 = tpu.matmul %84, %85, %cst_65 {dimension_numbers = #tpu.dot_dimension_numbers<[1], [0], [0], [1], [0, 0, 1, 1], [], []>} : vector<2x64xf32>, vector<64x120xf32>, vector<2x120xf32> -> vector<2x120xf32>
    %87 = vector.extract_strided_slice %76 {offsets = [6, 0], sizes = [2, 64], strides = [1, 1]} : vector<8x64xf32> to vector<2x64xf32>
    %88 = vector.extract_strided_slice %77 {offsets = [192, 0], sizes = [64, 120], strides = [1, 1]} : vector<256x120xf32> to vector<64x120xf32>
    %cst_66 = arith.constant dense<0.000000e+00> : vector<2x120xf32>
    %89 = tpu.matmul %87, %88, %cst_66 {dimension_numbers = #tpu.dot_dimension_numbers<[1], [0], [0], [1], [0, 0, 1, 1], [], []>} : vector<2x64xf32>, vector<64x120xf32>, vector<2x120xf32> -> vector<2x120xf32>
    %90 = arith.addf %80, %83 : vector<2x120xf32>
    %91 = arith.addf %86, %89 : vector<2x120xf32>
    %92 = arith.addf %90, %91 : vector<2x120xf32>
    %c0_67 = arith.constant 0 : index
    %c0_68 = arith.constant 0 : index
    %93 = vector.load %arg10[%c0_67, %c0_68] : memref<1x120xf32, #tpu.memory_space<vmem>>, vector<1x120xf32>
    %94 = vector.broadcast %93 : vector<1x120xf32> to vector<2x120xf32>
    %95 = arith.addf %92, %94 : vector<2x120xf32>
    %cst_69 = arith.constant 0.000000e+00 : f32
    %96 = vector.broadcast %cst_69 : f32 to vector<2x120xf32>
    %97 = arith.cmpf ogt, %95, %96 : vector<2x120xf32>
    %cst_70 = arith.constant 0.000000e+00 : f32
    %98 = vector.broadcast %cst_70 : f32 to vector<2x120xf32>
    %99 = arith.minimumf %95, %98 : vector<2x120xf32>
    %100 = math.exp %99 : vector<2x120xf32>
    %cst_71 = arith.constant 1.000000e+00 : f32
    %101 = vector.broadcast %cst_71 : f32 to vector<2x120xf32>
    %102 = arith.subf %100, %101 : vector<2x120xf32>
    %103 = arith.select %97, %95, %102 : vector<2x120xi1>, vector<2x120xf32>
    %c0_72 = arith.constant 0 : index
    %c0_73 = arith.constant 0 : index
    %104 = vector.load %arg11[%c0_72, %c0_73] : memref<120x84xf32, #tpu.memory_space<vmem>>, vector<120x84xf32>
    %cst_74 = arith.constant dense<0.000000e+00> : vector<2x84xf32>
    %105 = tpu.matmul %103, %104, %cst_74 {dimension_numbers = #tpu.dot_dimension_numbers<[1], [0], [0], [1], [0, 0, 1, 1], [], []>} : vector<2x120xf32>, vector<120x84xf32>, vector<2x84xf32> -> vector<2x84xf32>
    %c0_75 = arith.constant 0 : index
    %c0_76 = arith.constant 0 : index
    %106 = vector.load %arg12[%c0_75, %c0_76] : memref<1x84xf32, #tpu.memory_space<vmem>>, vector<1x84xf32>
    %107 = vector.broadcast %106 : vector<1x84xf32> to vector<2x84xf32>
    %108 = arith.addf %105, %107 : vector<2x84xf32>
    %cst_77 = arith.constant 0.000000e+00 : f32
    %109 = vector.broadcast %cst_77 : f32 to vector<2x84xf32>
    %110 = arith.cmpf ogt, %108, %109 : vector<2x84xf32>
    %cst_78 = arith.constant 0.000000e+00 : f32
    %111 = vector.broadcast %cst_78 : f32 to vector<2x84xf32>
    %112 = arith.minimumf %108, %111 : vector<2x84xf32>
    %113 = math.exp %112 : vector<2x84xf32>
    %cst_79 = arith.constant 1.000000e+00 : f32
    %114 = vector.broadcast %cst_79 : f32 to vector<2x84xf32>
    %115 = arith.subf %113, %114 : vector<2x84xf32>
    %116 = arith.select %110, %108, %115 : vector<2x84xi1>, vector<2x84xf32>
    %c0_80 = arith.constant 0 : index
    %c0_81 = arith.constant 0 : index
    %117 = vector.load %arg13[%c0_80, %c0_81] : memref<84x3xf32, #tpu.memory_space<vmem>>, vector<84x3xf32>
    %cst_82 = arith.constant dense<0.000000e+00> : vector<2x3xf32>
    %118 = tpu.matmul %116, %117, %cst_82 {dimension_numbers = #tpu.dot_dimension_numbers<[1], [0], [0], [1], [0, 0, 1, 1], [], []>} : vector<2x84xf32>, vector<84x3xf32>, vector<2x3xf32> -> vector<2x3xf32>
    %c0_83 = arith.constant 0 : index
    %c0_84 = arith.constant 0 : index
    %119 = vector.load %arg14[%c0_83, %c0_84] : memref<1x3xf32, #tpu.memory_space<vmem>>, vector<1x3xf32>
    %120 = vector.broadcast %119 : vector<1x3xf32> to vector<2x3xf32>
    %121 = arith.addf %118, %120 : vector<2x3xf32>
    %cst_85 = arith.constant dense<0xFF800000> : vector<3xf32>
    %122 = vector.multi_reduction <maximumf>, %121, %cst_85 [0] : vector<2x3xf32> to vector<3xf32>
    %123 = vector.shape_cast %122 : vector<3xf32> to vector<1x3xf32>
    %124 = vector.broadcast %123 : vector<1x3xf32> to vector<2x3xf32>
    %125 = arith.subf %121, %124 : vector<2x3xf32>
    %126 = math.exp %125 : vector<2x3xf32>
    %cst_86 = arith.constant dense<0.000000e+00> : vector<3xf32>
    %127 = vector.multi_reduction <add>, %126, %cst_86 [0] : vector<2x3xf32> to vector<3xf32>
    %128 = vector.shape_cast %127 : vector<3xf32> to vector<1x3xf32>
    %129 = vector.broadcast %128 : vector<1x3xf32> to vector<2x3xf32>
    %130 = arith.divf %126, %129 : vector<2x3xf32>
    %c0_87 = arith.constant 0 : index
    %c0_88 = arith.constant 0 : index
    %131 = vector.load %arg15[%c0_87, %c0_88] : memref<2x3xf32, #tpu.memory_space<vmem>>, vector<2x3xf32>
    tpu.vector_store %arg15[%c0_87, %c0_88], %130 {strides = array<i32>} : memref<2x3xf32, #tpu.memory_space<vmem>>, vector<2x3xf32>,
    return
  }
}

</mosaic_0001>

<bundles_post_ra>
// kernel: model_forward.1
= control target key start
LH: loop header
LB: loop body
LE: loop exit
PB: predicated region body
PF: predicated region fallthrough
CT: control target
= control target key end

     0   :  { %v2890_v4 = vmov 0.0   ;;  %vm111_vm0 = vcmask 97280   ;;  %s3939_s0 = inlined_call_operand.vmem [shape: f32[48,140], index: 0, kind: input, shape index: {}]   ;;  %s3940_s1 = inlined_call_operand.vmem [shape: f32[140,144], index: 1, kind: input, shape index: {}]   ;;  %s3941_s2 = inlined_call_operand.vmem [shape: f32[1,144], index: 2, kind: input, shape index: {}]   ;;  %s3942_s3 = inlined_call_operand.vmem [shape: f32[2,144,72], index: 3, kind: input, shape index: {}]   ;;  %s3943_s4 = inlined_call_operand.vmem [shape: f32[2,24,48], index: 4, kind: input, shape index: {}]   ;;  %s3944_s5 = inlined_call_operand.vmem [shape: f32[5,72,128], index: 5, kind: input, shape index: {}]   ;;  %s3945_s6 = inlined_call_operand.vmem [shape: f32[1,128], index: 6, kind: input, shape index: {}]   ;;  %s3946_s7 = inlined_call_operand.vmem [shape: f32[2,128,64], index: 7, kind: input, shape index: {}]   ;;  %s3947_s8 = inlined_call_operand.vmem [shape: f32[2,8,16], index: 8, kind: input, shape index: {}]   ;;  %s3948_s9 = inlined_call_operand.vmem [shape: f32[256,120], index: 9, kind: input, shape index: {}]   ;;  %s3949_s10 = inlined_call_operand.vmem [shape: f32[1,120], index: 10, kind: input, shape index: {}]   ;;  %s3950_s11 = inlined_call_operand.vmem [shape: f32[120,84], index: 11, kind: input, shape index: {}]   ;;  %s3951_s12 = inlined_call_operand.vmem [shape: f32[1,84], index: 12, kind: input, shape index: {}]   ;;  %s3952_s13 = inlined_call_operand.vmem [shape: f32[84,3], index: 13, kind: input, shape index: {}]   ;;  %s3953_s14 = inlined_call_operand.vmem [shape: f32[1,3], index: 14, kind: input, shape index: {}]   ;;  %s3954_s15 = inlined_call_operand.hbm [shape: f32[2,3], index: 15, kind: output, shape index: {}]  }
   0x1   :  { %v94_v0 = vld [vmem:[%s3940_s1 + $0xf8] sm:$0xff]  ;;  %v93_v1 = vld [vmem:[%s3940_s1 + $0xf0] sm:$0xff]  ;;  %v92_v2 = vld [vmem:[%s3940_s1 + $0xe8] sm:$0xff]  ;;  %347 = vmatprep.subr.mxu1 %v2890_v4 }
   0x2   :  { %137 = vmatprep.subr.mxu0 %v94_v0  ;;  %v91_v3 = vld [vmem:[%s3940_s1 + $0xe0] sm:$0xff]  ;;  %v90_v5 = vld [vmem:[%s3940_s1 + $0xd8] sm:$0xff]  ;;  %v89_v6 = vld [vmem:[%s3940_s1 + $0xd0] sm:$0xff] }
   0x3   :  { %138 = vmatpush1.msra.mxu0 %v93_v1  ;;  %v88_v7 = vld [vmem:[%s3940_s1 + $0xc8] sm:$0xff]  ;;  %v87_v8 = vld [vmem:[%s3940_s1 + $0xc0] sm:$0xff]  ;;  %v86_v9 = vld [vmem:[%s3940_s1 + $0xb8] sm:$0xff] }
   0x4   :  { %139 = vmatprep.subr.mxu0 %v92_v2  ;;  %v85_v10 = vld [vmem:[%s3940_s1 + $0xb0] sm:$0xff]  ;;  %v84_v11 = vld [vmem:[%s3940_s1 + $0xa8] sm:$0xff]  ;;  %v83_v12 = vld [vmem:[%s3940_s1 + $0xa0] sm:$0xff] }
   0x5   :  { %140 = vmatpush1.msra.mxu0 %v91_v3  ;;  %v82_v13 = vld [vmem:[%s3940_s1 + $0x98] sm:$0xff]  ;;  %v81_v14 = vld [vmem:[%s3940_s1 + $0x90] sm:$0xff]  ;;  %v80_v15 = vld [vmem:[%s3940_s1 + $0x88] sm:$0xff] }
   0x6   :  { %141 = vmatprep.subr.mxu0 %v90_v5  ;;  %v52_v16 = vld [vmem:[%s3939_s0 + $0x8] sm:$0xff]  ;;  %v79_v17 = vld [vmem:[%s3940_s1 + $0x80] sm:$0xff]  ;;  %v78_v18 = vld [vmem:[%s3940_s1 + $0x78] sm:$0xff] }
   0x7   :  { %142 = vmatpush1.msra.mxu0 %v89_v6  ;;  %2148 = vmatprep.mubr.msk.f32.mxu0 %vm111_vm0, %v52_v16  ;;  %v77_v19 = vld [vmem:[%s3940_s1 + $0x70] sm:$0xff]  ;;  %v76_v20 = vld [vmem:[%s3940_s1 + $0x68] sm:$0xff]  ;;  %v325_v21 = vld [vmem:[%s3942_s3 + $0x78] sm:$0xff] }
   0x8   :  { %143 = vmatprep.subr.mxu0 %v88_v7  ;;  %v324_v22 = vld [vmem:[%s3942_s3 + $0x70] sm:$0xff]  ;;  %v75_v23 = vld [vmem:[%s3940_s1 + $0x60] sm:$0xff]  ;;  %348 = vmatpush1.msra.mxu1 %v325_v21  ;;  %v74_v24 = vld [vmem:[%s3940_s1 + $0x58] sm:$0xff] }
   0x9   :  { %144 = vmatpush1.msra.mxu0 %v87_v8  ;;  %349 = vmatprep.subr.mxu1 %v2890_v4  ;;  %v323_v25 = vld [vmem:[%s3942_s3 + $0x68] sm:$0xff]  ;;  %v73_v26 = vld [vmem:[%s3940_s1 + $0x50] sm:$0xff] }
   0xa   :  { %145 = vmatprep.subr.mxu0 %v86_v9  ;;  %350 = vmatpush1.msra.mxu1 %v324_v22 }
   0xb   :  { %146 = vmatpush1.msra.mxu0 %v85_v10 }
   0xc   :  { %147 = vmatprep.subr.mxu0 %v84_v11 }
   0xd   :  { %148 = vmatpush1.msra.mxu0 %v83_v12 }
   0xe   :  { %149 = vmatprep.subr.mxu0 %v82_v13 }
   0xf   :  { %150 = vmatpush1.msra.mxu0 %v81_v14 }
  0x10   :  { %151 = vmatprep.subr.mxu0 %v80_v15 }
  0x11   :  { %152 = vmatpush1.msra.mxu0 %v79_v17 }
  0x12   :  { %153 = vmatprep.subr.mxu0 %v78_v18 }
  0x13   :  { %154 = vmatpush1.msra.mxu0 %v77_v19 }
  0x14   :  { %155 = vmatprep.subr.mxu0 %v76_v20 }
  0x15   :  { %20 = vsyncpa [#allocation3], 0  ;;  %156 = vmatpush1.msra.mxu0 %v75_v23  ;;  %v72_v27 = vld [vmem:[%s3940_s1 + $0x48] sm:$0xff]  ;;  %351 = vmatprep.subr.mxu1 %v2890_v4  ;;  %v322_v28 = vld [vmem:[%s3942_s3 + $0x60] sm:$0xff]  ;;  %vm130_vm1 = vcmask 1043456   ;;  %v101_v22 = vlaneseq  ;;  %vm328_vm2 = vcmask 130048  }
  0x16   :  { %157 = vmatprep.subr.mxu0 %v74_v24  ;;  %v71_v29 = vld [vmem:[%s3940_s1 + $0x40] sm:$0xff]  ;;  %352 = vmatpush1.msra.mxu1 %v323_v25  ;;  %v70_v30 = vld [vmem:[%s3940_s1 + $0x38] sm:$0xff]  ;;  %v69_v31 = vld [vmem:[%s3940_s1 + $0x30] sm:$0xff]  ;;  %vm2891_vm15 = vmmov 0  }
  0x17   :  { %158 = vmatpush1.msra.mxu0 %v73_v26  ;;  %353 = vmatprep.subr.mxu1 %v2890_v4  ;;  %v68_v32 = vld [vmem:[%s3940_s1 + $0x28] sm:$0xff]  ;;  %v67_v33 = vld [vmem:[%s3940_s1 + $0x20] sm:$0xff]  ;;  %v66_v34 = vld [vmem:[%s3940_s1 + $0x18] sm:$0xff]  ;;  %v102_v23 = vshrl.u32 %v101_v22, 7 }
  0x18   :  { %159 = vmatprep.subr.mxu0 %v72_v27  ;;  %354 = vmatpush1.msra.mxu1 %v322_v28  ;;  %v65_v35 = vld [vmem:[%s3940_s1 + $0x10] sm:$0xff]  ;;  %v64_v36 = vld [vmem:[%s3940_s1 + $0x8] sm:$0xff]  ;;  %v63_v37 = vld [vmem:[%s3940_s1] sm:$0xff] }
  0x19   :  { %160 = vmatpush1.msra.mxu0 %v71_v29  ;;  %355 = vmatprep.subr.mxu1 %v2890_v4  ;;  %v98_v38 = vld [vmem:[%s3940_s1 + $0x118] sm:$0xf]  ;;  %v97_v39 = vld [vmem:[%s3940_s1 + $0x110] sm:$0xf]  ;;  %v96_v40 = vld [vmem:[%s3940_s1 + $0x108] sm:$0xff]  ;;  %v103_v24 = vsub.s32 0, %v102_v23 }
  0x1a   :  { %161 = vmatprep.subr.mxu0 %v70_v30  ;;  %v95_v41 = vld [vmem:[%s3940_s1 + $0x100] sm:$0xff]  ;;  %v54_v43 = vld [vmem:[%s3939_s0 + $0x18] sm:$0xff]  ;;  %v2187_v44 = vld [vmem:[%s3942_s3 + $0x108] sm:$0xff]  ;;  %v107_v26 = vsub.s32 1, %v102_v23 }
  0x1b   :  { %162 = vmatpush1.msra.mxu0 %v69_v31  ;;  %v51_v42 = vld [vmem:[%s3939_s0] sm:$0xff]  ;;  %v53_v46 = vld [vmem:[%s3939_s0 + $0x10] sm:$0xff]  ;;  %v56_v47 = vld [vmem:[%s3939_s0 + $0x28] sm:$0xff] }
  0x1c   :  { %163 = vmatprep.subr.mxu0 %v68_v32  ;;  %v2186_v45 = vld [vmem:[%s3942_s3 + $0x100] sm:$0xff]  ;;  %v2185_v48 = vld [vmem:[%s3942_s3 + $0xf8] sm:$0xff]  ;;  %v2184_v49 = vld [vmem:[%s3942_s3 + $0xf0] sm:$0xff] }
  0x1d   :  { %164 = vmatpush1.msra.mxu0 %v67_v33  ;;  %v55_v50 = vld [vmem:[%s3939_s0 + $0x20] sm:$0xff]  ;;  %v58_v51 = vld [vmem:[%s3939_s0 + $0x38] sm:$0xff]  ;;  %v57_v52 = vld [vmem:[%s3939_s0 + $0x30] sm:$0xff] }
  0x1e   :  { %165 = vmatprep.subr.mxu0 %v66_v34  ;;  %v60_v53 = vld [vmem:[%s3939_s0 + $0x48] sm:$0xff]  ;;  %v59_v54 = vld [vmem:[%s3939_s0 + $0x40] sm:$0xff]  ;;  %v62_v55 = vld [vmem:[%s3939_s0 + $0x58] sm:$0xff] }
  0x1f   :  { %166 = vmatpush1.msra.mxu0 %v65_v35  ;;  %v61_v56 = vld [vmem:[%s3939_s0 + $0x50] sm:$0xff]  ;;  %v321_v57 = vld [vmem:[%s3942_s3 + $0x58] sm:$0xff]  ;;  %v2183_v58 = vld [vmem:[%s3942_s3 + $0xe8] sm:$0xff] }
  0x20   :  { %167 = vmatprep.subr.mxu0 %v64_v36  ;;  %356 = vmatpush1.msra.mxu1 %v321_v57  ;;  %v320_v59 = vld [vmem:[%s3942_s3 + $0x50] sm:$0xff]  ;;  %v2182_v60 = vld [vmem:[%s3942_s3 + $0xe0] sm:$0xff]  ;;  %v319_v61 = vld [vmem:[%s3942_s3 + $0x48] sm:$0xff] }
  0x21   :  { %168 = vmatpush1.msra.mxu0 %v63_v37  ;;  %357 = vmatprep.subr.mxu1 %v2890_v4  ;;  %v2181_v62 = vld [vmem:[%s3942_s3 + $0xd8] sm:$0xff]  ;;  %v318_v63 = vld [vmem:[%s3942_s3 + $0x40] sm:$0xff]  ;;  %v2180_v0 = vld [vmem:[%s3942_s3 + $0xd0] sm:$0xff] }
  0x22   :  { %2146 = vmatprep.subr.msk.mxu0 %vm130_vm1, %v98_v38  ;;  %358 = vmatpush1.msra.mxu1 %v320_v59  ;;  %v317_v1 = vld [vmem:[%s3942_s3 + $0x38] sm:$0xff]  ;;  %v2179_v2 = vld [vmem:[%s3942_s3 + $0xc8] sm:$0xff]  ;;  %v316_v3 = vld [vmem:[%s3942_s3 + $0x30] sm:$0xff] }
  0x23   :  { %2147 = vmatpush2.msk.msra.mxu0 %vm130_vm1, %v97_v39  ;;  %359 = vmatprep.subr.mxu1 %v2890_v4  ;;  %v2178_v5 = vld [vmem:[%s3942_s3 + $0xc0] sm:$0xff]  ;;  %v315_v6 = vld [vmem:[%s3942_s3 + $0x28] sm:$0xff]  ;;  %v2177_v7 = vld [vmem:[%s3942_s3 + $0xb8] sm:$0xff] }
  0x24   :  { %199 = vmatprep.subr.mxu0 %v96_v40  ;;  %360 = vmatpush1.msra.mxu1 %v319_v61  ;;  %v314_v8 = vld [vmem:[%s3942_s3 + $0x20] sm:$0xff]  ;;  %v2176_v9 = vld [vmem:[%s3942_s3 + $0xb0] sm:$0xff]  ;;  %v313_v10 = vld [vmem:[%s3942_s3 + $0x18] sm:$0xff] }
  0x25   :  { %200 = vmatpush2.msra.mxu0 %v95_v41  ;;  %361 = vmatprep.subr.mxu1 %v2890_v4  ;;  %v2175_v11 = vld [vmem:[%s3942_s3 + $0xa8] sm:$0xff]  ;;  %v312_v12 = vld [vmem:[%s3942_s3 + $0x10] sm:$0xff]  ;;  %v2174_v13 = vld [vmem:[%s3942_s3 + $0xa0] sm:$0xff] }
  0x26   :  { %202 = vmatmul.mubr.f32.vlgmr.msra.gmra.mxu0 %v51_v42  ;;  %461 = vmatprep.subr.mxu0 %v2890_v4  ;;  %v311_v14 = vld [vmem:[%s3942_s3 + $0x8] sm:$0xff]  ;;  %v2173_v15 = vld [vmem:[%s3942_s3 + $0x98] sm:$0xff]  ;;  %v310_v16 = vld [vmem:[%s3942_s3] sm:$0xff] }
  0x27   :  { %2149 = vmatprep.mubr.msk.f32.mxu0 %vm111_vm0, %v54_v43  ;;  %462 = vmatpush1.msra.mxu0 %v2187_v44  ;;  %v2172_v17 = vld [vmem:[%s3942_s3 + $0x90] sm:$0xff]  ;;  %v327_v18 = vld [vmem:[%s3942_s3 + $0x88] sm:$0xff]  ;;  %v2189_v19 = vld [vmem:[%s3942_s3 + $0x118] sm:$0xff] }
  0x28   :  { %463 = vmatprep.subr.mxu0 %v2890_v4  ;;  %362 = vmatpush1.msra.mxu1 %v318_v63  ;;  %v326_v20 = vld [vmem:[%s3942_s3 + $0x80] sm:$0xff]  ;;  %v2188_v21 = vld [vmem:[%s3942_s3 + $0x110] sm:$0xff] }
  0x29   :  { %464 = vmatpush1.msra.mxu0 %v2186_v45  ;;  %363 = vmatprep.subr.mxu1 %v2890_v4  ;;  %v99_v25 = vld [vmem:[%s3941_s2] sm:$0x3] }
  0x2a   :  { %208 = vmatmul.mubr.f32.gmra.mxu0 %v53_v46  ;;  %465 = vmatprep.subr.mxu0 %v2890_v4  ;;  %v104_v27 = vrot.slane %v99_v25, %v103_v24  ;;  %v108_v28 = vrot.slane %v99_v25, %v107_v26 }
  0x2b   :  { %2150 = vmatprep.mubr.msk.f32.mxu0 %vm111_vm0, %v56_v47  ;;  %466 = vmatpush1.msra.mxu0 %v2185_v48 }
  0x2c   :  { %467 = vmatprep.subr.mxu0 %v2890_v4  ;;  %364 = vmatpush1.msra.mxu1 %v317_v1 }
  0x2d   :  { %468 = vmatpush1.msra.mxu0 %v2184_v49  ;;  %365 = vmatprep.subr.mxu1 %v2890_v4 }
  0x2e   :  { %214 = vmatmul.mubr.f32.gmra.mxu0 %v55_v50  ;;  %469 = vmatprep.subr.mxu0 %v2890_v4 }
  0x2f   :  { %2151 = vmatprep.mubr.msk.f32.mxu0 %vm111_vm0, %v58_v51  ;;  %470 = vmatpush1.msra.mxu0 %v2183_v58 }
  0x30   :  { %471 = vmatprep.subr.mxu0 %v2890_v4  ;;  %366 = vmatpush1.msra.mxu1 %v316_v3 }
  0x31   :  { %472 = vmatpush1.msra.mxu0 %v2182_v60  ;;  %367 = vmatprep.subr.mxu1 %v2890_v4 }
  0x32   :  { %220 = vmatmul.mubr.f32.gmra.mxu0 %v57_v52  ;;  %473 = vmatprep.subr.mxu0 %v2890_v4 }
  0x33   :  { %2152 = vmatprep.mubr.msk.f32.mxu0 %vm111_vm0, %v60_v53  ;;  %474 = vmatpush1.msra.mxu0 %v2181_v62 }
  0x34   :  { %475 = vmatprep.subr.mxu0 %v2890_v4  ;;  %368 = vmatpush1.msra.mxu1 %v315_v6 }
  0x35   :  { %476 = vmatpush1.msra.mxu0 %v2180_v0  ;;  %369 = vmatprep.subr.mxu1 %v2890_v4 }
  0x36   :  { %226 = vmatmul.mubr.f32.gmra.mxu0 %v59_v54  ;;  %477 = vmatprep.subr.mxu0 %v2890_v4 }
  0x37   :  { %2153 = vmatprep.mubr.msk.f32.mxu0 %vm111_vm0, %v62_v55  ;;  %478 = vmatpush1.msra.mxu0 %v2179_v2  ;;  %vm565_vm0 = vcmask 392192  }
  0x38   :  { %479 = vmatprep.subr.mxu0 %v2890_v4  ;;  %370 = vmatpush1.msra.mxu1 %v314_v8 }
  0x39   :  { %480 = vmatpush1.msra.mxu0 %v2178_v5  ;;  %371 = vmatprep.subr.mxu1 %v2890_v4 }
  0x3a   :  { %232 = vmatmul.mubr.f32.gmra.mxu0 %v61_v56  ;;  %481 = vmatprep.subr.mxu0 %v2890_v4 }
  0x3b   :  { %482 = vmatpush1.msra.mxu0 %v2177_v7  ;;  %372 = vmatpush1.msra.mxu1 %v313_v10 }
  0x3c   :  { %483 = vmatprep.subr.mxu0 %v2890_v4  ;;  %373 = vmatprep.subr.mxu1 %v2890_v4 }
  0x3d   :  { %484 = vmatpush1.msra.mxu0 %v2176_v9  ;;  %374 = vmatpush1.msra.mxu1 %v312_v12 }
  0x3e   :  { %485 = vmatprep.subr.mxu0 %v2890_v4  ;;  %375 = vmatprep.subr.mxu1 %v2890_v4 }
  0x3f   :  { %486 = vmatpush1.msra.mxu0 %v2175_v11  ;;  %376 = vmatpush1.msra.mxu1 %v311_v14 }
  0x40   :  { %487 = vmatprep.subr.mxu0 %v2890_v4  ;;  %377 = vmatprep.subr.mxu1 %v2890_v4 }
  0x41   :  { %488 = vmatpush1.msra.mxu0 %v2174_v13  ;;  %378 = vmatpush1.msra.mxu1 %v310_v16 }
  0x42   :  { %489 = vmatprep.subr.mxu0 %v2890_v4  ;;  %407 = vmatprep.subr.mxu1 %v2890_v4 }
  0x43   :  { %490 = vmatpush1.msra.mxu0 %v2173_v15  ;;  %408 = vmatpush2.msra.mxu1 %v327_v18 }
  0x44   :  { %491 = vmatprep.subr.mxu0 %v2890_v4  ;;  %409 = vmatprep.subr.mxu1 %v2890_v4 }
  0x45   :  { %492 = vmatpush1.msra.mxu0 %v2172_v17  ;;  %410 = vmatpush2.msra.mxu1 %v326_v20 }
  0x46   :  { %521 = vmatprep.subr.mxu0 %v2890_v4  ;;  %2464 = vmatprep.subr.mxu1 %v2890_v4 }
  0x47   :  { %522 = vmatpush2.msra.mxu0 %v2189_v19 }
  0x48   :  { %523 = vmatprep.subr.mxu0 %v2890_v4 }
  0x49   :  { %524 = vmatpush2.msra.mxu0 %v2188_v21 }
  0xe6   :  { %v203_v29 = vpop.f32.mrf.mxu0 }
  0xe7   :  { %v3273_v30 = vadd.f32 %v203_v29, %v104_v27 }
  0xe8   :  { %v205_v31 = vpop.f32.mrf.mxu0 }
  0xe9   :  { %v250_v32 = vmin.f32 %v3273_v30, 0.0  ;;  %v3276_v33 = vadd.f32 %v205_v31, %v108_v28  ;;  %vm238_vm3 = vcmp.gt.f32.partialorder %v3273_v30, 0.0 }
  0xea   :  { %v209_v34 = vpop.f32.mrf.mxu0 }
  0xeb   :  { %v262_v35 = vmul.f32 1.442695, %v250_v32  ;;  %v251_v36 = vmin.f32 %v3276_v33, 0.0  ;;  %v3279_v37 = vadd.f32 %v209_v34, %v104_v27  ;;  %vm239_vm4 = vcmp.gt.f32.partialorder %v3276_v33, 0.0 }
  0xec   :  { %v211_v38 = vpop.f32.mrf.mxu0 }
  0xed   :  { %2832 = vpow2.f32 %v262_v35  ;;  %v264_v39 = vmul.f32 1.442695, %v251_v36  ;;  %v252_v40 = vmin.f32 %v3279_v37, 0.0  ;;  %v3282_v41 = vadd.f32 %v211_v38, %v108_v28 }
  0xee   :  { %v215_v42 = vpop.f32.mrf.mxu0  ;;  %vm240_vm6 = vcmp.gt.f32.partialorder %v3279_v37, 0.0 }
  0xef   :  { %2834 = vpow2.f32 %v264_v39  ;;  %v266_v43 = vmul.f32 1.442695, %v252_v40  ;;  %v253_v44 = vmin.f32 %v3282_v41, 0.0  ;;  %v3285_v45 = vadd.f32 %v215_v42, %v104_v27 }
  0xf0   :  { %v217_v46 = vpop.f32.mrf.mxu0  ;;  %vm241_vm5 = vcmp.gt.f32.partialorder %v3282_v41, 0.0 }
  0xf1   :  { %2836 = vpow2.f32 %v266_v43  ;;  %v268_v47 = vmul.f32 1.442695, %v253_v44  ;;  %v3287_v48 = vadd.f32 %v217_v46, %v108_v28  ;;  %v254_v49 = vmin.f32 %v3285_v45, 0.0 }
  0xf2   :  { %v221_v50 = vpop.f32.mrf.mxu0  ;;  %vm242_vm8 = vcmp.gt.f32.partialorder %v3285_v45, 0.0 }
  0xf3   :  { %2838 = vpow2.f32 %v268_v47  ;;  %v255_v51 = vmin.f32 %v3287_v48, 0.0  ;;  %v3291_v52 = vadd.f32 %v221_v50, %v104_v27  ;;  %v270_v53 = vmul.f32 1.442695, %v254_v49 }
  0xf4   :  { %v223_v54 = vpop.f32.mrf.mxu0  ;;  %vm243_vm7 = vcmp.gt.f32.partialorder %v3287_v48, 0.0 }
  0xf5   :  { %v272_v55 = vmul.f32 1.442695, %v255_v51  ;;  %v256_v56 = vmin.f32 %v3291_v52, 0.0  ;;  %v3294_v57 = vadd.f32 %v223_v54, %v108_v28  ;;  %2840 = vpow2.f32 %v270_v53 }
  0xf6   :  { %v227_v58 = vpop.f32.mrf.mxu0  ;;  %vm244_vm10 = vcmp.gt.f32.partialorder %v3291_v52, 0.0 }
  0xf7   :  { %2842 = vpow2.f32 %v272_v55  ;;  %v274_v59 = vmul.f32 1.442695, %v256_v56  ;;  %v257_v60 = vmin.f32 %v3294_v57, 0.0  ;;  %v3297_v61 = vadd.f32 %v227_v58, %v104_v27 }
  0xf8   :  { %v229_v62 = vpop.f32.mrf.mxu0  ;;  %vm245_vm9 = vcmp.gt.f32.partialorder %v3294_v57, 0.0 }
  0xf9   :  { %2844 = vpow2.f32 %v274_v59  ;;  %v276_v63 = vmul.f32 1.442695, %v257_v60  ;;  %v3299_v0 = vadd.f32 %v229_v62, %v108_v28  ;;  %v258_v2 = vmin.f32 %v3297_v61, 0.0 }
  0xfa   :  { %v2833_v1 = vpop.eup %2832  ;;  %v233_v3 = vpop.f32.mrf.mxu0  ;;  %vm246_vm12 = vcmp.gt.f32.partialorder %v3297_v61, 0.0 }
  0xfb   :  { %2846 = vpow2.f32 %v276_v63  ;;  %v259_v5 = vmin.f32 %v3299_v0, 0.0  ;;  %v3303_v6 = vadd.f32 %v233_v3, %v104_v27  ;;  %v278_v8 = vmul.f32 1.442695, %v258_v2 }
  0xfc   :  { %v2835_v7 = vpop.eup %2834  ;;  %v235_v9 = vpop.f32.mrf.mxu0  ;;  %v2154_v10 = vadd.f32 -1.0, %v2833_v1  ;;  %vm247_vm11 = vcmp.gt.f32.partialorder %v3299_v0, 0.0 }
  0xfd   :  { %v280_v11 = vmul.f32 1.442695, %v259_v5  ;;  %v260_v12 = vmin.f32 %v3303_v6, 0.0  ;;  %v3306_v13 = vadd.f32 %v235_v9, %v108_v28  ;;  %v2155_v14 = vadd.f32 -1.0, %v2835_v7 }
  0xfe   :  { %v2837_v15 = vpop.eup %2836  ;;  %2848 = vpow2.f32 %v278_v8  ;;  %v298_v20 = vsel %vm238_vm3, %v3273_v30, %v2154_v10  ;;  %vm248_vm14 = vcmp.gt.f32.partialorder %v3303_v6, 0.0  ;;  %vm773_vm3 = vcmask 1045504  }
  0xff   :  { %2850 = vpow2.f32 %v280_v11  ;;  %v282_v16 = vmul.f32 1.442695, %v260_v12  ;;  %v261_v17 = vmin.f32 %v3306_v13, 0.0  ;;  %v299_v19 = vsel %vm239_vm4, %v3276_v33, %v2155_v14 }
 0x100   :  { %v2839_v18 = vpop.eup %2838  ;;  %2166 = vmatprep.mubr.msk.f32.mxu1 %vm328_vm2, %v299_v19  ;;  %2190 = vmatprep.mubr.msk.f32.mxu0 %vm328_vm2, %v299_v19  ;;  %v2156_v23 = vadd.f32 -1.0, %v2837_v15  ;;  %vm249_vm13 = vcmp.gt.f32.partialorder %v3306_v13, 0.0  ;;  %v564_v19 = vld [vmem:[%s3943_s4 + $0x10] sm:$0xff]  ;;  %vm779_vm4 = vcmask 588800  }
 0x101   :  { %2852 = vpow2.f32 %v282_v16  ;;  %v284_v21 = vmul.f32 1.442695, %v261_v17  ;;  %v2157_v22 = vadd.f32 -1.0, %v2839_v18  ;;  %412 = vmatmul.mubr.f32.vlgmr.msra.gmra.mxu1 %v298_v20  ;;  %526 = vmatmul.mubr.f32.vlgmr.msra.gmra.mxu0 %v298_v20  ;;  %v562_v17 = vld [vmem:[%s3943_s4] sm:$0xff]  ;;  %v563_v18 = vld [vmem:[%s3943_s4 + $0x8] sm:$0xff]  ;;  %v2199_v20 = vld [vmem:[%s3943_s4 + $0x18] sm:$0xff] }
 0x102   :  { %v2841_v24 = vpop.eup %2840  ;;  %v300_v27 = vsel %vm240_vm6, %v3279_v37, %v2156_v23  ;;  %v2213_v23 = vld [vmem:[%s3944_s5 + $0x88] sm:$0xff] }
 0x103   :  { %2854 = vpow2.f32 %v284_v21  ;;  %v301_v25 = vsel %vm241_vm5, %v3282_v41, %v2157_v22  ;;  %v2158_v29 = vadd.f32 -1.0, %v2841_v24  ;;  %v2200_v21 = vld [vmem:[%s3943_s4 + $0x20] sm:$0xff]  ;;  %v2201_v22 = vld [vmem:[%s3943_s4 + $0x28] sm:$0xff]  ;;  %v2233_v24 = vld [vmem:[%s3944_s5 + $0x118] sm:$0xff]  ;;  %vm879_vm5 = vcmask 1041408  }
 0x104   :  { %v2843_v26 = vpop.eup %2842  ;;  %2167 = vmatprep.mubr.msk.f32.mxu1 %vm328_vm2, %v301_v25  ;;  %2191 = vmatprep.mubr.msk.f32.mxu0 %vm328_vm2, %v301_v25  ;;  %v2212_v25 = vld [vmem:[%s3944_s5 + $0x80] sm:$0xff] }
 0x105   :  { %v2159_v28 = vadd.f32 -1.0, %v2843_v26  ;;  %417 = vmatmul.mubr.f32.gmra.mxu1 %v300_v27  ;;  %531 = vmatmul.mubr.f32.gmra.mxu0 %v300_v27  ;;  %v302_v33 = vsel %vm242_vm8, %v3285_v45, %v2158_v29  ;;  %v2232_v26 = vld [vmem:[%s3944_s5 + $0x110] sm:$0xff]  ;;  %v2211_v27 = vld [vmem:[%s3944_s5 + $0x78] sm:$0xff]  ;;  %vm1936_vm8 = vcmask 982016  }
 0x106   :  { %v2845_v30 = vpop.eup %2844  ;;  %2527 = vmatprep.subr.mxu0 %v2233_v24  ;;  %v2210_v29 = vld [vmem:[%s3944_s5 + $0x70] sm:$0xff] }
 0x107   :  { %v303_v31 = vsel %vm243_vm7, %v3287_v48, %v2159_v28  ;;  %v2160_v35 = vadd.f32 -1.0, %v2845_v30  ;;  %2528 = vmatpush3.msra.mxu0 %v2233_v24  ;;  %v2231_v28 = vld [vmem:[%s3944_s5 + $0x108] sm:$0xff]  ;;  %v2230_v30 = vld [vmem:[%s3944_s5 + $0x100] sm:$0xff] }
 0x108   :  { %v2847_v32 = vpop.eup %2846  ;;  %2168 = vmatprep.mubr.msk.f32.mxu1 %vm328_vm2, %v303_v31  ;;  %2192 = vmatprep.mubr.msk.f32.mxu0 %vm328_vm2, %v303_v31  ;;  %v2209_v31 = vld [vmem:[%s3944_s5 + $0x68] sm:$0xff] }
 0x109   :  { %v2161_v34 = vadd.f32 -1.0, %v2847_v32  ;;  %422 = vmatmul.mubr.f32.gmra.mxu1 %v302_v33  ;;  %536 = vmatmul.mubr.f32.gmra.mxu0 %v302_v33  ;;  %v304_v39 = vsel %vm244_vm10, %v3291_v52, %v2160_v35  ;;  %v2229_v32 = vld [vmem:[%s3944_s5 + $0xf8] sm:$0xff]  ;;  %v2208_v33 = vld [vmem:[%s3944_s5 + $0x60] sm:$0xff] }
 0x10a   :  { %2529 = vmatprep.subr.mxu0 %v2232_v26  ;;  %v2207_v35 = vld [vmem:[%s3944_s5 + $0x58] sm:$0xff] }
 0x10b   :  { %v2849_v36 = vpop.eup %2848  ;;  %v305_v37 = vsel %vm245_vm9, %v3294_v57, %v2161_v34  ;;  %2530 = vmatpush3.msra.mxu0 %v2232_v26  ;;  %v2228_v34 = vld [vmem:[%s3944_s5 + $0xf0] sm:$0xff]  ;;  %v2222_v26 = vld [vmem:[%s3944_s5 + $0xc0] sm:$0xff] }
 0x10c   :  { %v2851_v38 = vpop.eup %2850  ;;  %2169 = vmatprep.mubr.msk.f32.mxu1 %vm328_vm2, %v305_v37  ;;  %2193 = vmatprep.mubr.msk.f32.mxu0 %vm328_vm2, %v305_v37  ;;  %v2162_v41 = vadd.f32 -1.0, %v2849_v36  ;;  %v2227_v36 = vld [vmem:[%s3944_s5 + $0xe8] sm:$0xff]  ;;  %v2206_v37 = vld [vmem:[%s3944_s5 + $0x50] sm:$0xff] }
 0x10d   :  { %v2163_v40 = vadd.f32 -1.0, %v2851_v38  ;;  %427 = vmatmul.mubr.f32.gmra.mxu1 %v304_v39  ;;  %541 = vmatmul.mubr.f32.gmra.mxu0 %v304_v39  ;;  %v2226_v38 = vld [vmem:[%s3944_s5 + $0xe0] sm:$0xff]  ;;  %v2205_v39 = vld [vmem:[%s3944_s5 + $0x48] sm:$0xff] }
 0x10e   :  { %v2853_v42 = vpop.eup %2852  ;;  %v306_v45 = vsel %vm246_vm12, %v3297_v61, %v2162_v41  ;;  %2531 = vmatprep.subr.mxu0 %v2231_v28  ;;  %v2244_v41 = vld [vmem:[%s3944_s5 + $0x160] sm:$0xff] }
 0x10f   :  { %v307_v43 = vsel %vm247_vm11, %v3299_v0, %v2163_v40  ;;  %v2164_v47 = vadd.f32 -1.0, %v2853_v42  ;;  %2532 = vmatpush3.msra.mxu0 %v2231_v28  ;;  %v2225_v40 = vld [vmem:[%s3944_s5 + $0xd8] sm:$0xff]  ;;  %v759_v42 = vld [vmem:[%s3944_s5 + $0x40] sm:$0xff]  ;;  %v2220_v28 = vld [vmem:[%s3944_s5 + $0xb0] sm:$0xff]  ;;  %vm2111_vm11 = vcmask 17408  }
 0x110   :  { %v2855_v44 = vpop.eup %2854  ;;  %2170 = vmatprep.mubr.msk.f32.mxu1 %vm328_vm2, %v307_v43  ;;  %2194 = vmatprep.mubr.msk.f32.mxu0 %vm328_vm2, %v307_v43 }
 0x111   :  { %v2165_v46 = vadd.f32 -1.0, %v2855_v44  ;;  %432 = vmatmul.mubr.f32.gmra.mxu1 %v306_v45  ;;  %546 = vmatmul.mubr.f32.gmra.mxu0 %v306_v45  ;;  %v308_v49 = vsel %vm248_vm14, %v3303_v6, %v2164_v47 }
 0x112   :  { %2533 = vmatprep.subr.mxu0 %v2230_v30 }
 0x113   :  { %v309_v48 = vsel %vm249_vm13, %v3306_v13, %v2165_v46  ;;  %2534 = vmatpush3.msra.mxu0 %v2230_v30  ;;  %v2218_v30 = vld [vmem:[%s3944_s5 + $0xa0] sm:$0xff] }
 0x114   :  { %2171 = vmatprep.mubr.msk.f32.mxu1 %vm328_vm2, %v309_v48  ;;  %2195 = vmatprep.mubr.msk.f32.mxu0 %vm328_vm2, %v309_v48 }
 0x115   :  { %437 = vmatmul.mubr.f32.gmra.mxu1 %v308_v49  ;;  %551 = vmatmul.mubr.f32.gmra.mxu0 %v308_v49 }
 0x116   :  { %2476 = vmatprep.mubr.msk.f32.mxu1 %vm2891_vm15, %v2890_v4  ;;  %2535 = vmatprep.subr.mxu0 %v2229_v32 }
 0x117   :  { %2536 = vmatpush3.msra.mxu0 %v2229_v32 }
 0x118   :  { %2537 = vmatprep.subr.mxu0 %v2228_v34 }
 0x119   :  { %2538 = vmatpush3.msra.mxu0 %v2228_v34 }
 0x11a   :  { %2539 = vmatprep.subr.mxu0 %v2227_v36 }
 0x11b   :  { %2540 = vmatpush3.msra.mxu0 %v2227_v36  ;;  %v2269_v36 = vld [vmem:[%s3946_s7 + $0xf8] sm:$0xff] }
 0x11c   :  { %2541 = vmatprep.subr.mxu0 %v2226_v38 }
 0x11d   :  { %2542 = vmatpush3.msra.mxu0 %v2226_v38  ;;  %v2268_v38 = vld [vmem:[%s3946_s7 + $0xf0] sm:$0xff] }
 0x11e   :  { %2543 = vmatprep.subr.mxu0 %v2225_v40 }
 0x11f   :  { %2544 = vmatpush3.msra.mxu0 %v2225_v40  ;;  %v2267_v40 = vld [vmem:[%s3946_s7 + $0xe8] sm:$0xff] }
 0x120   :  { %2569 = vmatprep.subr.mxu0 %v759_v42 }
 0x1c1   :  { %v413_v50 = vpop.f32.mrf.mxu1  ;;  %v527_v51 = vpop.f32.mrf.mxu0 }
 0x1c2   :  { %v556_v16 = vmax.f32 %v413_v50, %v527_v51 }
 0x1c3   :  { %v415_v52 = vpop.f32.mrf.mxu1  ;;  %v529_v53 = vpop.f32.mrf.mxu0 }
 0x1c5   :  { %v418_v54 = vpop.f32.mrf.mxu1  ;;  %v532_v55 = vpop.f32.mrf.mxu0 }
 0x1c6   :  { %v557_v15 = vmax.f32 %v418_v54, %v532_v55 }
 0x1c7   :  { %v420_v56 = vpop.f32.mrf.mxu1  ;;  %v534_v57 = vpop.f32.mrf.mxu0 }
 0x1c9   :  { %v423_v58 = vpop.f32.mrf.mxu1  ;;  %v537_v59 = vpop.f32.mrf.mxu0 }
 0x1ca   :  { %v558_v14 = vmax.f32 %v423_v58, %v537_v59 }
 0x1cb   :  { %v425_v60 = vpop.f32.mrf.mxu1  ;;  %v539_v61 = vpop.f32.mrf.mxu0 }
 0x1cd   :  { %v428_v62 = vpop.f32.mrf.mxu1  ;;  %v542_v63 = vpop.f32.mrf.mxu0 }
 0x1ce   :  { %v559_v13 = vmax.f32 %v428_v62, %v542_v63 }
 0x1cf   :  { %v430_v0 = vpop.f32.mrf.mxu1  ;;  %v544_v1 = vpop.f32.mrf.mxu0 }
 0x1d1   :  { %v433_v2 = vpop.f32.mrf.mxu1  ;;  %v547_v3 = vpop.f32.mrf.mxu0 }
 0x1d2   :  { %v560_v12 = vmax.f32 %v433_v2, %v547_v3 }
 0x1d3   :  { %v435_v5 = vpop.f32.mrf.mxu1  ;;  %v549_v6 = vpop.f32.mrf.mxu0 }
 0x1d4   :  { %v2243_v5 = vld [vmem:[%s3944_s5 + $0x158] sm:$0xff] }
 0x1d5   :  { %v438_v7 = vpop.f32.mrf.mxu1  ;;  %v552_v8 = vpop.f32.mrf.mxu0  ;;  %v758_v6 = vld [vmem:[%s3944_s5 + $0x38] sm:$0xff] }
 0x1d6   :  { %v561_v9 = vmax.f32 %v438_v7, %v552_v8  ;;  %v2242_v7 = vld [vmem:[%s3944_s5 + $0x150] sm:$0xff] }
 0x1d7   :  { %v440_v10 = vpop.f32.mrf.mxu1  ;;  %v554_v11 = vpop.f32.mrf.mxu0  ;;  %v757_v8 = vld [vmem:[%s3944_s5 + $0x30] sm:$0xff] }
 0x1d8   :  { %2465 = vmatpush3.msra.mxu1 %v561_v9  ;;  %v756_v10 = vld [vmem:[%s3944_s5 + $0x28] sm:$0xff]  ;;  %v2240_v11 = vld [vmem:[%s3944_s5 + $0x140] sm:$0xff] }
 0x1d9   :  { %2466 = vmatprep.subr.mxu1 %v2890_v4 }
 0x1da   :  { %2467 = vmatpush3.msra.mxu1 %v560_v12 }
 0x1db   :  { %2468 = vmatprep.subr.mxu1 %v2890_v4 }
 0x1dc   :  { %2469 = vmatpush3.msra.mxu1 %v559_v13 }
 0x1dd   :  { %2470 = vmatprep.subr.mxu1 %v2890_v4 }
 0x1de   :  { %2471 = vmatpush3.msra.mxu1 %v558_v14 }
 0x1df   :  { %2472 = vmatprep.subr.mxu1 %v2890_v4 }
 0x1e0   :  { %2473 = vmatpush3.msra.mxu1 %v557_v15 }
 0x1e1   :  { %2474 = vmatprep.subr.mxu1 %v2890_v4 }
 0x1e2   :  { %2475 = vmatpush3.msra.mxu1 %v556_v16 }
 0x1e3   :  { %2477 = vmatmul.mubr.msk.f32.vlgmr.msra.gmra.mxu1 %vm565_vm0, %v562_v17  ;;  %2485 = vmatprep.subr.mxu1 %v2890_v4  ;;  %v2237_v17 = vld [vmem:[%s3944_s5 + $0x128] sm:$0xff] }
 0x1e4   :  { %2486 = vmatpush3.msra.mxu1 %v561_v9  ;;  %2479 = vmatprep.mubr.msk.f32.mxu1 %vm2891_vm15, %v2890_v4  ;;  %v2241_v9 = vld [vmem:[%s3944_s5 + $0x148] sm:$0xff] }
 0x1e5   :  { %2487 = vmatprep.subr.mxu1 %v2890_v4 }
 0x1e6   :  { %2488 = vmatpush3.msra.mxu1 %v560_v12  ;;  %v755_v12 = vld [vmem:[%s3944_s5 + $0x20] sm:$0xff] }
 0x1e7   :  { %2480 = vmatmul.mubr.msk.f32.gmra.mxu1 %vm565_vm0, %v563_v18  ;;  %2489 = vmatprep.subr.mxu1 %v2890_v4  ;;  %v752_v18 = vld [vmem:[%s3944_s5 + $0x8] sm:$0xff] }
 0x1e8   :  { %2490 = vmatpush3.msra.mxu1 %v559_v13  ;;  %2482 = vmatprep.mubr.msk.f32.mxu1 %vm2891_vm15, %v2890_v4  ;;  %v2239_v13 = vld [vmem:[%s3944_s5 + $0x138] sm:$0xff] }
 0x1e9   :  { %2491 = vmatprep.subr.mxu1 %v2890_v4 }
 0x1ea   :  { %2492 = vmatpush3.msra.mxu1 %v558_v14  ;;  %v754_v14 = vld [vmem:[%s3944_s5 + $0x18] sm:$0xff] }
 0x1eb   :  { %2483 = vmatmul.mubr.msk.f32.gmra.mxu1 %vm565_vm0, %v564_v19  ;;  %2493 = vmatprep.subr.mxu1 %v2890_v4  ;;  %v2236_v19 = vld [vmem:[%s3944_s5 + $0x120] sm:$0xff] }
 0x1ec   :  { %2494 = vmatpush3.msra.mxu1 %v557_v15  ;;  %2497 = vmatprep.mubr.msk.f32.mxu1 %vm2891_vm15, %v2890_v4  ;;  %v2238_v15 = vld [vmem:[%s3944_s5 + $0x130] sm:$0xff] }
 0x1ed   :  { %2495 = vmatprep.subr.mxu1 %v2890_v4 }
 0x1ee   :  { %2496 = vmatpush3.msra.mxu1 %v556_v16  ;;  %v753_v16 = vld [vmem:[%s3944_s5 + $0x10] sm:$0xff] }
 0x1ef   :  { %2498 = vmatmul.mubr.msk.f32.vlgmr.msra.gmra.mxu1 %vm565_vm0, %v2199_v20  ;;  %2506 = vmatprep.subr.mxu1 %v2213_v23  ;;  %v751_v20 = vld [vmem:[%s3944_s5] sm:$0xff] }
 0x1f0   :  { %2500 = vmatprep.mubr.msk.f32.mxu1 %vm2891_vm15, %v2890_v4  ;;  %2507 = vmatpush3.msra.mxu1 %v2213_v23 }
 0x1f1   :  { %2508 = vmatprep.subr.mxu1 %v2212_v25 }
 0x1f2   :  { %2509 = vmatpush3.msra.mxu1 %v2212_v25  ;;  %v2223_v25 = vld [vmem:[%s3944_s5 + $0xc8] sm:$0xff] }
 0x1f3   :  { %2501 = vmatmul.mubr.msk.f32.gmra.mxu1 %vm565_vm0, %v2200_v21  ;;  %2510 = vmatprep.subr.mxu1 %v2211_v27 }
 0x1f4   :  { %2503 = vmatprep.mubr.msk.f32.mxu1 %vm2891_vm15, %v2890_v4  ;;  %2511 = vmatpush3.msra.mxu1 %v2211_v27  ;;  %v2221_v27 = vld [vmem:[%s3944_s5 + $0xb8] sm:$0xff] }
 0x1f5   :  { %2512 = vmatprep.subr.mxu1 %v2210_v29 }
 0x1f6   :  { %2513 = vmatpush3.msra.mxu1 %v2210_v29  ;;  %v2219_v29 = vld [vmem:[%s3944_s5 + $0xa8] sm:$0xff] }
 0x1f7   :  { %2504 = vmatmul.mubr.msk.f32.gmra.mxu1 %vm565_vm0, %v2201_v22  ;;  %2514 = vmatprep.subr.mxu1 %v2209_v31  ;;  %v2224_v22 = vld [vmem:[%s3944_s5 + $0xd0] sm:$0xff] }
 0x1f8   :  { %2515 = vmatpush3.msra.mxu1 %v2209_v31  ;;  %v2217_v31 = vld [vmem:[%s3944_s5 + $0x98] sm:$0xff] }
 0x1f9   :  { %2516 = vmatprep.subr.mxu1 %v2208_v33 }
 0x1fa   :  { %2517 = vmatpush3.msra.mxu1 %v2208_v33  ;;  %v2216_v33 = vld [vmem:[%s3944_s5 + $0x90] sm:$0xff] }
 0x1fb   :  { %2518 = vmatprep.subr.mxu1 %v2207_v35 }
 0x1fc   :  { %2519 = vmatpush3.msra.mxu1 %v2207_v35  ;;  %v1254_v35 = vld [vmem:[%s3946_s7 + $0x78] sm:$0xff] }
 0x1fd   :  { %2520 = vmatprep.subr.mxu1 %v2206_v37 }
 0x1fe   :  { %2521 = vmatpush3.msra.mxu1 %v2206_v37  ;;  %v1253_v37 = vld [vmem:[%s3946_s7 + $0x70] sm:$0xff] }
 0x1ff   :  { %2522 = vmatprep.subr.mxu1 %v2205_v39 }
 0x200   :  { %2523 = vmatpush3.msra.mxu1 %v2205_v39  ;;  %v1252_v39 = vld [vmem:[%s3946_s7 + $0x68] sm:$0xff] }
 0x201   :  { %2548 = vmatprep.subr.mxu1 %v2244_v41 }
 0x2a3   :  { %v641_v43 = vpop.f32.mrf.mxu1 }
 0x2a5   :  { %v2478_v44 = vpop.f32.mrf.mxu1 }
 0x2a6   :  { %v2265_v44 = vld [vmem:[%s3946_s7 + $0xd8] sm:$0xff] }
 0x2a7   :  { %v646_v45 = vpop.f32.mrf.mxu1 }
 0x2a9   :  { %v2481_v46 = vpop.f32.mrf.mxu1 }
 0x2aa   :  { %v2264_v46 = vld [vmem:[%s3946_s7 + $0xd0] sm:$0xff] }
 0x2ab   :  { %v651_v47 = vpop.f32.mrf.mxu1 }
 0x2ad   :  { %v2484_v48 = vpop.f32.mrf.mxu1 }
 0x2ae   :  { %v2263_v48 = vld [vmem:[%s3946_s7 + $0xc8] sm:$0xff] }
 0x2af   :  { %v734_v49 = vpop.f32.mrf.mxu1 }
 0x2b0   :  { %v3452_v51 = vmax.f32 %v641_v43, %v734_v49  ;;  %v1250_v43 = vld [vmem:[%s3946_s7 + $0x58] sm:$0xff]  ;;  %v1247_v49 = vld [vmem:[%s3946_s7 + $0x40] sm:$0xff] }
 0x2b1   :  { %v2499_v50 = vpop.f32.mrf.mxu1 }
 0x2b2   :  { %v774_v55 = vrot.slane %v3452_v51, 2  ;;  %v880_v57 = vrot.slane %v3452_v51, 6  ;;  %v1130_v23 = vrot.slane %v3452_v51, 4  ;;  %v2262_v50 = vld [vmem:[%s3946_s7 + $0xc0] sm:$0xff] }
 0x2b3   :  { %v739_v52 = vpop.f32.mrf.mxu1 }
 0x2b4   :  { %v3454_v53 = vmax.f32 %v646_v45, %v739_v52  ;;  %v1249_v45 = vld [vmem:[%s3946_s7 + $0x50] sm:$0xff]  ;;  %v2261_v52 = vld [vmem:[%s3946_s7 + $0xb8] sm:$0xff] }
 0x2b5   :  { %v2502_v54 = vpop.f32.mrf.mxu1 }
 0x2b6   :  { %v775_v56 = vrot.slane %v3454_v53, 2  ;;  %v881_v58 = vrot.slane %v3454_v53, 6  ;;  %v1131_v21 = vrot.slane %v3454_v53, 4  ;;  %v2260_v54 = vld [vmem:[%s3946_s7 + $0xb0] sm:$0xff] }
 0x2b7   :  { %v744_v59 = vpop.f32.mrf.mxu1 }
 0x2b8   :  { %v3460_v60 = vmax.f32 %v651_v47, %v744_v59  ;;  %v776_v61 = vsel %vm773_vm3, %v774_v55, %v775_v56  ;;  %v882_v62 = vsel %vm879_vm5, %v880_v57, %v881_v58  ;;  %v1132_v24 = vsel %vm130_vm1, %v1130_v23, %v1131_v21  ;;  %v1248_v47 = vld [vmem:[%s3946_s7 + $0x48] sm:$0xff]  ;;  %v1243_v57 = vld [vmem:[%s3946_s7 + $0x20] sm:$0xff]  ;;  %v1242_v59 = vld [vmem:[%s3946_s7 + $0x18] sm:$0xff] }
 0x2b9   :  { %2524 = vmatprep.mubr.msk.f32.mxu1 %vm779_vm4, %v776_v61  ;;  %2545 = vmatprep.mubr.msk.f32.mxu0 %vm779_vm4, %v882_v62  ;;  %v2505_v63 = vpop.f32.mrf.mxu1  ;;  %v1244_v55 = vld [vmem:[%s3946_s7 + $0x28] sm:$0xff]  ;;  %v1241_v61 = vld [vmem:[%s3946_s7 + $0x10] sm:$0xff] }
 0x2ba   :  { %v777_v0 = vrot.slane %v3460_v60, 2  ;;  %v883_v1 = vrot.slane %v3460_v60, 6  ;;  %v1133_v32 = vrot.slane %v3460_v60, 4  ;;  %v2256_v62 = vld [vmem:[%s3946_s7 + $0x90] sm:$0xff]  ;;  %v1240_v63 = vld [vmem:[%s3946_s7 + $0x8] sm:$0xff] }
 0x2bc   :  { %v778_v2 = vsel %vm773_vm3, %v775_v56, %v777_v0  ;;  %v884_v3 = vsel %vm879_vm5, %v881_v58, %v883_v1  ;;  %v1134_v34 = vsel %vm130_vm1, %v1131_v21, %v1133_v32  ;;  %v2259_v56 = vld [vmem:[%s3946_s7 + $0xa8] sm:$0xff]  ;;  %v2258_v58 = vld [vmem:[%s3946_s7 + $0xa0] sm:$0xff] }
 0x2bd   :  { %2525 = vmatmul.mubr.msk.f32.vlgmr.msra.gmra.mxu1 %vm779_vm4, %v778_v2  ;;  %2546 = vmatmul.mubr.msk.f32.vlgmr.msra.gmra.mxu0 %vm779_vm4, %v884_v3  ;;  %v2255_v0 = vld [vmem:[%s3946_s7 + $0x88] sm:$0xff]  ;;  %v1239_v1 = vld [vmem:[%s3946_s7] sm:$0xff] }
 0x2be   :  { %2549 = vmatpush3.msra.mxu1 %v2244_v41  ;;  %2570 = vmatpush3.msra.mxu0 %v759_v42  ;;  %v1251_v41 = vld [vmem:[%s3946_s7 + $0x60] sm:$0xff] }
 0x2bf   :  { %2550 = vmatprep.subr.mxu1 %v2243_v5  ;;  %2566 = vmatprep.mubr.msk.f32.mxu1 %vm779_vm4, %v3454_v53  ;;  %v2266_v42 = vld [vmem:[%s3946_s7 + $0xe0] sm:$0xff] }
 0x2c0   :  { %2571 = vmatprep.subr.mxu0 %v758_v6  ;;  %2587 = vmatprep.mubr.msk.f32.mxu0 %vm779_vm4, %v3452_v51  ;;  %v1246_v51 = vld [vmem:[%s3946_s7 + $0x38] sm:$0xff]  ;;  %v2254_v2 = vld [vmem:[%s3946_s7 + $0x80] sm:$0xff] }
 0x2c1   :  { %2551 = vmatpush3.msra.mxu1 %v2243_v5  ;;  %2572 = vmatpush3.msra.mxu0 %v758_v6 }
 0x2c2   :  { %2552 = vmatprep.subr.mxu1 %v2242_v7  ;;  %2573 = vmatprep.subr.mxu0 %v757_v8 }
 0x2c3   :  { %2553 = vmatpush3.msra.mxu1 %v2242_v7  ;;  %2574 = vmatpush3.msra.mxu0 %v757_v8 }
 0x2c4   :  { %2554 = vmatprep.subr.mxu1 %v2241_v9  ;;  %2575 = vmatprep.subr.mxu0 %v756_v10 }
 0x2c5   :  { %2555 = vmatpush3.msra.mxu1 %v2241_v9  ;;  %2576 = vmatpush3.msra.mxu0 %v756_v10 }
 0x2c6   :  { %2556 = vmatprep.subr.mxu1 %v2240_v11  ;;  %2577 = vmatprep.subr.mxu0 %v755_v12 }
 0x2c7   :  { %2557 = vmatpush3.msra.mxu1 %v2240_v11  ;;  %2578 = vmatpush3.msra.mxu0 %v755_v12 }
 0x2c8   :  { %2558 = vmatprep.subr.mxu1 %v2239_v13  ;;  %2579 = vmatprep.subr.mxu0 %v754_v14 }
 0x2c9   :  { %2559 = vmatpush3.msra.mxu1 %v2239_v13  ;;  %2580 = vmatpush3.msra.mxu0 %v754_v14 }
 0x2ca   :  { %2560 = vmatprep.subr.mxu1 %v2238_v15  ;;  %2581 = vmatprep.subr.mxu0 %v753_v16 }
 0x2cb   :  { %2561 = vmatpush3.msra.mxu1 %v2238_v15  ;;  %2582 = vmatpush3.msra.mxu0 %v753_v16 }
 0x2cc   :  { %2562 = vmatprep.subr.mxu1 %v2237_v17  ;;  %2583 = vmatprep.subr.mxu0 %v752_v18 }
 0x2cd   :  { %2563 = vmatpush3.msra.mxu1 %v2237_v17  ;;  %2584 = vmatpush3.msra.mxu0 %v752_v18 }
 0x2ce   :  { %2564 = vmatprep.subr.mxu1 %v2236_v19  ;;  %2585 = vmatprep.subr.mxu0 %v751_v20 }
 0x2cf   :  { %2565 = vmatpush3.msra.mxu1 %v2236_v19  ;;  %2586 = vmatpush3.msra.mxu0 %v751_v20  ;;  %v2251_v19 = vld [vmem:[%s3945_s6] ss:$0 sm:$0xff] }
 0x2d0   :  { %2567 = vmatmul.mubr.msk.f32.vlgmr.msra.gmra.mxu1 %vm779_vm4, %v3460_v60  ;;  %2588 = vmatmul.mubr.msk.f32.vlgmr.msra.gmra.mxu0 %vm779_vm4, %v3454_v53  ;;  %v1245_v53 = vld [vmem:[%s3946_s7 + $0x30] sm:$0xff]  ;;  %v2257_v60 = vld [vmem:[%s3946_s7 + $0x98] sm:$0xff] }
 0x2d1   :  { %2590 = vmatprep.subr.mxu1 %v2224_v22  ;;  %2608 = vmatprep.mubr.msk.f32.mxu1 %vm779_vm4, %v1132_v24 }
 0x2d2   :  { %2591 = vmatpush3.msra.mxu1 %v2224_v22  ;;  %2611 = vmatprep.subr.mxu0 %v1254_v35 }
 0x2d3   :  { %2592 = vmatprep.subr.mxu1 %v2223_v25  ;;  %2612 = vmatpush3.msra.mxu0 %v1254_v35  ;;  %v1605_v35 = vld [vmem:[%s3948_s9 + $0xf8] sm:$0xff] }
 0x2d4   :  { %2593 = vmatpush3.msra.mxu1 %v2223_v25  ;;  %2613 = vmatprep.subr.mxu0 %v1253_v37 }
 0x2d5   :  { %2594 = vmatprep.subr.mxu1 %v2222_v26  ;;  %2614 = vmatpush3.msra.mxu0 %v1253_v37  ;;  %v1603_v37 = vld [vmem:[%s3948_s9 + $0xe8] sm:$0xff] }
 0x2d6   :  { %2595 = vmatpush3.msra.mxu1 %v2222_v26  ;;  %2615 = vmatprep.subr.mxu0 %v1252_v39 }
 0x2d7   :  { %2596 = vmatprep.subr.mxu1 %v2221_v27  ;;  %2616 = vmatpush3.msra.mxu0 %v1252_v39 }
 0x2d8   :  { %2597 = vmatpush3.msra.mxu1 %v2221_v27  ;;  %2617 = vmatprep.subr.mxu0 %v1251_v41 }
 0x2d9   :  { %2598 = vmatprep.subr.mxu1 %v2220_v28  ;;  %2618 = vmatpush3.msra.mxu0 %v1251_v41 }
 0x2da   :  { %2599 = vmatpush3.msra.mxu1 %v2220_v28  ;;  %2619 = vmatprep.subr.mxu0 %v1250_v43 }
 0x2db   :  { %2600 = vmatprep.subr.mxu1 %v2219_v29  ;;  %2620 = vmatpush3.msra.mxu0 %v1250_v43 }
 0x2dc   :  { %2601 = vmatpush3.msra.mxu1 %v2219_v29  ;;  %2621 = vmatprep.subr.mxu0 %v1249_v45 }
 0x2dd   :  { %2602 = vmatprep.subr.mxu1 %v2218_v30  ;;  %2622 = vmatpush3.msra.mxu0 %v1249_v45  ;;  %v1424_v45 = vld [vmem:[%s3947_s8] sm:$0xff] }
 0x2de   :  { %2603 = vmatpush3.msra.mxu1 %v2218_v30  ;;  %2623 = vmatprep.subr.mxu0 %v1248_v47 }
 0x2df   :  { %2604 = vmatprep.subr.mxu1 %v2217_v31  ;;  %2624 = vmatpush3.msra.mxu0 %v1248_v47  ;;  %v1589_v47 = vld [vmem:[%s3948_s9 + $0x78] sm:$0xff] }
 0x2e0   :  { %2605 = vmatpush3.msra.mxu1 %v2217_v31  ;;  %2625 = vmatprep.subr.mxu0 %v1247_v49 }
 0x2e1   :  { %2606 = vmatprep.subr.mxu1 %v2216_v33  ;;  %2626 = vmatpush3.msra.mxu0 %v1247_v49  ;;  %v1587_v49 = vld [vmem:[%s3948_s9 + $0x68] sm:$0xff] }
 0x2e2   :  { %2607 = vmatpush3.msra.mxu1 %v2216_v33  ;;  %2627 = vmatprep.subr.mxu0 %v1246_v51 }
 0x2e3   :  { %2609 = vmatmul.mubr.msk.f32.vlgmr.msra.gmra.mxu1 %vm779_vm4, %v1134_v34  ;;  %2646 = vmatprep.subr.mxu1 %v2269_v36 }
 0x2e4   :  { %2647 = vmatpush3.msra.mxu1 %v2269_v36  ;;  %2628 = vmatpush3.msra.mxu0 %v1246_v51  ;;  %v1604_v36 = vld [vmem:[%s3948_s9 + $0xf0] sm:$0xff]  ;;  %v1585_v51 = vld [vmem:[%s3948_s9 + $0x58] sm:$0xff] }
 0x2e5   :  { %2648 = vmatprep.subr.mxu1 %v2268_v38  ;;  %2629 = vmatprep.subr.mxu0 %v1245_v53 }
 0x2e6   :  { %2649 = vmatpush3.msra.mxu1 %v2268_v38  ;;  %2630 = vmatpush3.msra.mxu0 %v1245_v53  ;;  %v1602_v38 = vld [vmem:[%s3948_s9 + $0xe0] sm:$0xff]  ;;  %v1584_v53 = vld [vmem:[%s3948_s9 + $0x50] sm:$0xff] }
 0x2e7   :  { %2650 = vmatprep.subr.mxu1 %v2267_v40  ;;  %2631 = vmatprep.subr.mxu0 %v1244_v55 }
 0x2e8   :  { %2651 = vmatpush3.msra.mxu1 %v2267_v40  ;;  %2632 = vmatpush3.msra.mxu0 %v1244_v55  ;;  %v1583_v55 = vld [vmem:[%s3948_s9 + $0x48] sm:$0xff] }
 0x2e9   :  { %2652 = vmatprep.subr.mxu1 %v2266_v42  ;;  %2633 = vmatprep.subr.mxu0 %v1243_v57 }
 0x2ea   :  { %2653 = vmatpush3.msra.mxu1 %v2266_v42  ;;  %2634 = vmatpush3.msra.mxu0 %v1243_v57  ;;  %v1582_v57 = vld [vmem:[%s3948_s9 + $0x40] sm:$0xff] }
 0x2eb   :  { %2654 = vmatprep.subr.mxu1 %v2265_v44  ;;  %2635 = vmatprep.subr.mxu0 %v1242_v59 }
 0x2ec   :  { %2655 = vmatpush3.msra.mxu1 %v2265_v44  ;;  %2636 = vmatpush3.msra.mxu0 %v1242_v59 }
 0x2ed   :  { %2656 = vmatprep.subr.mxu1 %v2264_v46  ;;  %2637 = vmatprep.subr.mxu0 %v1241_v61 }
 0x2ee   :  { %2657 = vmatpush3.msra.mxu1 %v2264_v46  ;;  %2638 = vmatpush3.msra.mxu0 %v1241_v61  ;;  %v2271_v46 = vld [vmem:[%s3947_s8 + $0x8] sm:$0xff] }
 0x2ef   :  { %2658 = vmatprep.subr.mxu1 %v2263_v48  ;;  %2639 = vmatprep.subr.mxu0 %v1240_v63 }
 0x2f0   :  { %2659 = vmatpush3.msra.mxu1 %v2263_v48  ;;  %2640 = vmatpush3.msra.mxu0 %v1240_v63  ;;  %v1588_v48 = vld [vmem:[%s3948_s9 + $0x70] sm:$0xff] }
 0x2f1   :  { %2660 = vmatprep.subr.mxu1 %v2262_v50  ;;  %2641 = vmatprep.subr.mxu0 %v1239_v1 }
 0x2f2   :  { %2661 = vmatpush3.msra.mxu1 %v2262_v50  ;;  %2642 = vmatpush3.msra.mxu0 %v1239_v1  ;;  %v1586_v50 = vld [vmem:[%s3948_s9 + $0x60] sm:$0xff] }
 0x2f3   :  { %2662 = vmatprep.subr.mxu1 %v2261_v52  ;;  %2681 = vmatprep.subr.mxu0 %v2890_v4 }
 0x2f4   :  { %2663 = vmatpush3.msra.mxu1 %v2261_v52  ;;  %v1601_v52 = vld [vmem:[%s3948_s9 + $0xd8] sm:$0xff] }
 0x2f5   :  { %2664 = vmatprep.subr.mxu1 %v2260_v54 }
 0x2f6   :  { %2665 = vmatpush3.msra.mxu1 %v2260_v54  ;;  %v1600_v54 = vld [vmem:[%s3948_s9 + $0xd0] sm:$0xff] }
 0x2f7   :  { %2666 = vmatprep.subr.mxu1 %v2259_v56 }
 0x2f8   :  { %2667 = vmatpush3.msra.mxu1 %v2259_v56  ;;  %v1599_v56 = vld [vmem:[%s3948_s9 + $0xc8] sm:$0xff] }
 0x2f9   :  { %2668 = vmatprep.subr.mxu1 %v2258_v58 }
 0x2fa   :  { %2669 = vmatpush3.msra.mxu1 %v2258_v58  ;;  %v1598_v58 = vld [vmem:[%s3948_s9 + $0xc0] sm:$0xff] }
 0x2fb   :  { %2670 = vmatprep.subr.mxu1 %v2257_v60 }
 0x2fc   :  { %2671 = vmatpush3.msra.mxu1 %v2257_v60 }
 0x2fd   :  { %2672 = vmatprep.subr.mxu1 %v2256_v62 }
 0x2fe   :  { %2673 = vmatpush3.msra.mxu1 %v2256_v62 }
 0x2ff   :  { %2674 = vmatprep.subr.mxu1 %v2255_v0 }
 0x300   :  { %2675 = vmatpush3.msra.mxu1 %v2255_v0 }
 0x301   :  { %2676 = vmatprep.subr.mxu1 %v2254_v2 }
 0x302   :  { %2677 = vmatpush3.msra.mxu1 %v2254_v2  ;;  %v1581_v2 = vld [vmem:[%s3948_s9 + $0x38] sm:$0xff] }
 0x303   :  { %2714 = vmatprep.subr.mxu1 %v2890_v4 }
 0x37d   :  { %v2526_v3 = vpop.f32.mrf.mxu1  ;;  %v2547_v5 = vpop.f32.mrf.mxu0 }
 0x37f   :  { %v850_v6 = vpop.f32.mrf.mxu1  ;;  %v955_v7 = vpop.f32.mrf.mxu0 }
 0x390   :  { %v2568_v8 = vpop.f32.mrf.mxu1  ;;  %v2589_v9 = vpop.f32.mrf.mxu0 }
 0x391   :  { %v1127_v13 = vadd.f32 %v2589_v9, %v2526_v3  ;;  %v1597_v3 = vld [vmem:[%s3948_s9 + $0xb8] sm:$0xff]  ;;  %v1578_v9 = vld [vmem:[%s3948_s9 + $0x20] sm:$0xff] }
 0x392   :  { %v1044_v10 = vpop.f32.mrf.mxu1  ;;  %v1121_v11 = vpop.f32.mrf.mxu0 }
 0x393   :  { %v1122_v16 = vadd.f32 %v1121_v11, %v850_v6  ;;  %v1596_v6 = vld [vmem:[%s3948_s9 + $0xb0] sm:$0xff]  ;;  %v1577_v11 = vld [vmem:[%s3948_s9 + $0x18] sm:$0xff] }
 0x3a3   :  { %v2610_v12 = vpop.f32.mrf.mxu1 }
 0x3a4   :  { %v1211_v14 = vadd.f32 %v2610_v12, %v2547_v5  ;;  %v1580_v5 = vld [vmem:[%s3948_s9 + $0x30] sm:$0xff]  ;;  %v1593_v12 = vld [vmem:[%s3948_s9 + $0x98] sm:$0xff] }
 0x3a5   :  { %v1205_v15 = vpop.f32.mrf.mxu1 }
 0x3a6   :  { %v1215_v17 = vadd.f32 %v1211_v14, %v1127_v13  ;;  %v1206_v18 = vadd.f32 %v1205_v15, %v955_v7  ;;  %v1579_v7 = vld [vmem:[%s3948_s9 + $0x28] sm:$0xff]  ;;  %v1576_v13 = vld [vmem:[%s3948_s9 + $0x10] sm:$0xff] }
 0x3a7   :  { %v1592_v14 = vld [vmem:[%s3948_s9 + $0x90] sm:$0xff]  ;;  %v1575_v15 = vld [vmem:[%s3948_s9 + $0x8] sm:$0xff] }
 0x3a8   :  { %v1217_v20 = vadd.f32 %v2568_v8, %v1215_v17  ;;  %v1214_v21 = vadd.f32 %v1206_v18, %v1122_v16  ;;  %v1595_v8 = vld [vmem:[%s3948_s9 + $0xa8] sm:$0xff]  ;;  %v1574_v17 = vld [vmem:[%s3948_s9] sm:$0xff] }
 0x3a9   :  { %v1591_v16 = vld [vmem:[%s3948_s9 + $0x88] sm:$0xff]  ;;  %v1590_v18 = vld [vmem:[%s3948_s9 + $0x80] sm:$0xff] }
 0x3aa   :  { %v1226_v22 = vadd.f32 %v2251_v19, %v1217_v20  ;;  %v1216_v23 = vadd.f32 %v1214_v21, %v1044_v10  ;;  %v1594_v10 = vld [vmem:[%s3948_s9 + $0xa0] sm:$0xff]  ;;  %v1928_v20 = vld [vmem:[%s3950_s11 + $0x70] sm:$0xff]  ;;  %v1927_v21 = vld [vmem:[%s3950_s11 + $0x68] sm:$0xff] }
 0x3ac   :  { %v1230_v24 = vmin.f32 %v1226_v22, 0.0  ;;  %v1225_v25 = vadd.f32 %v2251_v19, %v1216_v23  ;;  %vm1228_vm7 = vcmp.gt.f32.partialorder %v1226_v22, 0.0  ;;  %v1925_v23 = vld [vmem:[%s3950_s11 + $0x58] sm:$0xff] }
 0x3ae   :  { %v1233_v26 = vmul.f32 1.442695, %v1230_v24  ;;  %v1229_v27 = vmin.f32 %v1225_v25, 0.0  ;;  %vm1227_vm6 = vcmp.gt.f32.partialorder %v1225_v25, 0.0  ;;  %v1924_v24 = vld [vmem:[%s3950_s11 + $0x50] sm:$0xff] }
 0x3b0   :  { %v1231_v28 = vmul.f32 1.442695, %v1229_v27  ;;  %2856 = vpow2.f32 %v1233_v26  ;;  %v1922_v26 = vld [vmem:[%s3950_s11 + $0x40] sm:$0xff]  ;;  %v1921_v27 = vld [vmem:[%s3950_s11 + $0x38] sm:$0xff] }
 0x3b2   :  { %2858 = vpow2.f32 %v1231_v28  ;;  %v1920_v28 = vld [vmem:[%s3950_s11 + $0x30] sm:$0xff] }
 0x3bd   :  { %v2857_v29 = vpop.eup %2856 }
 0x3be   :  { %v2253_v31 = vadd.f32 -1.0, %v2857_v29  ;;  %v1919_v29 = vld [vmem:[%s3950_s11 + $0x28] sm:$0xff] }
 0x3bf   :  { %v2859_v30 = vpop.eup %2858 }
 0x3c0   :  { %v2252_v32 = vadd.f32 -1.0, %v2859_v30  ;;  %v1238_v34 = vsel %vm1228_vm7, %v1226_v22, %v2253_v31  ;;  %v1926_v22 = vld [vmem:[%s3950_s11 + $0x60] sm:$0xff]  ;;  %v1917_v31 = vld [vmem:[%s3950_s11 + $0x18] sm:$0xff] }
 0x3c1   :  { %v1918_v30 = vld [vmem:[%s3950_s11 + $0x20] sm:$0xff] }
 0x3c2   :  { %v1237_v33 = vsel %vm1227_vm6, %v1225_v25, %v2252_v32  ;;  %v1923_v25 = vld [vmem:[%s3950_s11 + $0x48] sm:$0xff]  ;;  %v1916_v32 = vld [vmem:[%s3950_s11 + $0x10] sm:$0xff] }
 0x3c3   :  { %2643 = vmatprep.mubr.f32.mxu0 %v1237_v33  ;;  %2678 = vmatprep.mubr.f32.mxu1 %v1237_v33  ;;  %v1915_v33 = vld [vmem:[%s3950_s11 + $0x8] sm:$0xff] }
 0x3c4   :  { %2644 = vmatmul.mubr.f32.vlgmr.msra.gmra.mxu0 %v1238_v34  ;;  %2679 = vmatmul.mubr.f32.vlgmr.msra.gmra.mxu1 %v1238_v34  ;;  %v1914_v34 = vld [vmem:[%s3950_s11] sm:$0xff] }
 0x3c5   :  { %2685 = vmatprep.mubr.msk.f32.mxu0 %vm2891_vm15, %v2890_v4  ;;  %2730 = vmatprep.mubr.msk.f32.mxu1 %vm2891_vm15, %v2890_v4 }
 0x3c6   :  { %2715 = vmatpush3.msra.mxu1 %v1605_v35 }
 0x3c7   :  { %2716 = vmatprep.subr.mxu1 %v2890_v4 }
 0x3c8   :  { %2717 = vmatpush3.msra.mxu1 %v1604_v36 }
 0x3c9   :  { %2718 = vmatprep.subr.mxu1 %v2890_v4 }
 0x3ca   :  { %2719 = vmatpush3.msra.mxu1 %v1603_v37 }
 0x3cb   :  { %2720 = vmatprep.subr.mxu1 %v2890_v4 }
 0x3cc   :  { %2721 = vmatpush3.msra.mxu1 %v1602_v38 }
 0x3cd   :  { %2722 = vmatprep.subr.mxu1 %v2890_v4 }
 0x3ce   :  { %2723 = vmatpush3.msra.mxu1 %v1601_v52 }
 0x3cf   :  { %2724 = vmatprep.subr.mxu1 %v2890_v4 }
 0x3d0   :  { %2725 = vmatpush3.msra.mxu1 %v1600_v54  ;;  %v2025_v54 = vld [vmem:[%s3952_s13 + $0x48] sm:$0xff] }
 0x3d1   :  { %2726 = vmatprep.subr.mxu1 %v2890_v4 }
 0x3d2   :  { %2727 = vmatpush3.msra.mxu1 %v1599_v56  ;;  %v2023_v56 = vld [vmem:[%s3952_s13 + $0x38] sm:$0xff] }
 0x3d3   :  { %2728 = vmatprep.subr.mxu1 %v2890_v4 }
 0x3d4   :  { %2729 = vmatpush3.msra.mxu1 %v1598_v58  ;;  %v2021_v58 = vld [vmem:[%s3952_s13 + $0x28] sm:$0xff] }
 0x3d5   :  { %2752 = vmatprep.subr.mxu1 %v2890_v4 }
 0x484   :  { %v2645_v39 = vpop.f32.mrf.mxu0  ;;  %v2680_v40 = vpop.f32.mrf.mxu1 }
 0x485   :  { %v1423_v41 = vmax.f32 %v2645_v39, %v2680_v40 }
 0x486   :  { %v1321_v42 = vpop.f32.mrf.mxu0  ;;  %v1413_v43 = vpop.f32.mrf.mxu1 }
 0x487   :  { %v1422_v44 = vmax.f32 %v1321_v42, %v1413_v43  ;;  %2682 = vmatpush3.msra.mxu0 %v1423_v41  ;;  %v2277_v43 = vld [vmem:[%s3949_s10] ss:$0 sm:$0xff] }
 0x488   :  { %2683 = vmatprep.subr.mxu0 %v2890_v4 }
 0x489   :  { %2684 = vmatpush3.msra.mxu0 %v1422_v44 }
 0x48a   :  { %2686 = vmatmul.mubr.msk.f32.vlgmr.msra.gmra.mxu0 %vm328_vm2, %v1424_v45  ;;  %2688 = vmatprep.subr.mxu0 %v2890_v4 }
 0x48b   :  { %2689 = vmatpush3.msra.mxu0 %v1423_v41  ;;  %2692 = vmatprep.mubr.msk.f32.mxu0 %vm2891_vm15, %v2890_v4 }
 0x48c   :  { %2690 = vmatprep.subr.mxu0 %v2890_v4 }
 0x48d   :  { %2691 = vmatpush3.msra.mxu0 %v1422_v44 }
 0x48e   :  { %2693 = vmatmul.mubr.msk.f32.vlgmr.msra.gmra.mxu0 %vm328_vm2, %v2271_v46  ;;  %2695 = vmatprep.subr.mxu0 %v2890_v4  ;;  %vm1608_vm2 = vcmask 523264  }
 0x48f   :  { %2696 = vmatpush3.msra.mxu0 %v1589_v47  ;;  %2711 = vmatprep.mubr.msk.f32.mxu0 %vm2891_vm15, %v2890_v4 }
 0x490   :  { %2697 = vmatprep.subr.mxu0 %v2890_v4 }
 0x491   :  { %2698 = vmatpush3.msra.mxu0 %v1588_v48 }
 0x492   :  { %2699 = vmatprep.subr.mxu0 %v2890_v4 }
 0x493   :  { %2700 = vmatpush3.msra.mxu0 %v1587_v49 }
 0x494   :  { %2701 = vmatprep.subr.mxu0 %v2890_v4 }
 0x495   :  { %2702 = vmatpush3.msra.mxu0 %v1586_v50 }
 0x496   :  { %2703 = vmatprep.subr.mxu0 %v2890_v4 }
 0x497   :  { %2704 = vmatpush3.msra.mxu0 %v1585_v51 }
 0x498   :  { %2705 = vmatprep.subr.mxu0 %v2890_v4 }
 0x499   :  { %2706 = vmatpush3.msra.mxu0 %v1584_v53  ;;  %v2026_v53 = vld [vmem:[%s3952_s13 + $0x50] sm:$0xf] }
 0x49a   :  { %2707 = vmatprep.subr.mxu0 %v2890_v4 }
 0x49b   :  { %2708 = vmatpush3.msra.mxu0 %v1583_v55  ;;  %v2024_v55 = vld [vmem:[%s3952_s13 + $0x40] sm:$0xff] }
 0x49c   :  { %2709 = vmatprep.subr.mxu0 %v2890_v4 }
 0x49d   :  { %2710 = vmatpush3.msra.mxu0 %v1582_v57  ;;  %v2022_v57 = vld [vmem:[%s3952_s13 + $0x30] sm:$0xff] }
 0x49e   :  { %2733 = vmatprep.subr.mxu0 %v2890_v4 }
 0x54a   :  { %v1494_v59 = vpop.f32.mrf.mxu0 }
 0x54c   :  { %v2687_v60 = vpop.f32.mrf.mxu0 }
 0x54d   :  { %v2019_v60 = vld [vmem:[%s3952_s13 + $0x18] sm:$0xff] }
 0x54e   :  { %v1569_v61 = vpop.f32.mrf.mxu0 }
 0x54f   :  { %v1573_v62 = vmax.f32 %v1494_v59, %v1569_v61  ;;  %v2020_v59 = vld [vmem:[%s3952_s13 + $0x20] sm:$0xff]  ;;  %v2018_v61 = vld [vmem:[%s3952_s13 + $0x10] sm:$0xff] }
 0x550   :  { %v2694_v63 = vpop.f32.mrf.mxu0 }
 0x551   :  { %v1607_v0 = vrot.slane %v1573_v62, 2  ;;  %v1681_v1 = vrot.slane %v1573_v62, 6  ;;  %v1826_v19 = vrot.slane %v1573_v62, 4  ;;  %v2016_v63 = vld [vmem:[%s3952_s13] sm:$0xff] }
 0x553   :  { %2712 = vmatmul.mubr.msk.f32.vlgmr.msra.gmra.mxu0 %vm1608_vm2, %v1607_v0  ;;  %2731 = vmatmul.mubr.msk.f32.vlgmr.msra.gmra.mxu1 %vm1608_vm2, %v1681_v1  ;;  %v2279_v0 = vld [vmem:[%s3951_s12] ss:$0 sm:$0xff]  ;;  %s2892_s12 = smov [#allocation2]  }
 0x554   :  { %2734 = vmatpush3.msra.mxu0 %v1581_v2  ;;  %2753 = vmatpush3.msra.mxu1 %v1597_v3 }
 0x555   :  { %2735 = vmatprep.subr.mxu0 %v2890_v4  ;;  %2754 = vmatprep.subr.mxu1 %v2890_v4 }
 0x556   :  { %2736 = vmatpush3.msra.mxu0 %v1580_v5  ;;  %2755 = vmatpush3.msra.mxu1 %v1596_v6 }
 0x557   :  { %2737 = vmatprep.subr.mxu0 %v2890_v4  ;;  %2756 = vmatprep.subr.mxu1 %v2890_v4 }
 0x558   :  { %2738 = vmatpush3.msra.mxu0 %v1579_v7  ;;  %2757 = vmatpush3.msra.mxu1 %v1595_v8 }
 0x559   :  { %2739 = vmatprep.subr.mxu0 %v2890_v4  ;;  %2758 = vmatprep.subr.mxu1 %v2890_v4 }
 0x55a   :  { %2740 = vmatpush3.msra.mxu0 %v1578_v9  ;;  %2759 = vmatpush3.msra.mxu1 %v1594_v10  ;;  %v2282_v9 = vld [vmem:[%s3953_s14] ss:$0 sm:$0xff] }
 0x55b   :  { %2741 = vmatprep.subr.mxu0 %v2890_v4  ;;  %2760 = vmatprep.subr.mxu1 %v2890_v4 }
 0x55c   :  { %2742 = vmatpush3.msra.mxu0 %v1577_v11  ;;  %2761 = vmatpush3.msra.mxu1 %v1593_v12 }
 0x55d   :  { %2743 = vmatprep.subr.mxu0 %v2890_v4  ;;  %2762 = vmatprep.subr.mxu1 %v2890_v4 }
 0x55e   :  { %2744 = vmatpush3.msra.mxu0 %v1576_v13  ;;  %2763 = vmatpush3.msra.mxu1 %v1592_v14 }
 0x55f   :  { %2745 = vmatprep.subr.mxu0 %v2890_v4  ;;  %2764 = vmatprep.subr.mxu1 %v2890_v4 }
 0x560   :  { %2746 = vmatpush3.msra.mxu0 %v1575_v15  ;;  %2765 = vmatpush3.msra.mxu1 %v1591_v16 }
 0x561   :  { %2747 = vmatprep.subr.mxu0 %v2890_v4  ;;  %2766 = vmatprep.subr.mxu1 %v2890_v4 }
 0x562   :  { %2748 = vmatpush3.msra.mxu0 %v1574_v17  ;;  %2749 = vmatprep.mubr.msk.f32.mxu0 %vm2891_vm15, %v2890_v4 }
 0x563   :  { %2767 = vmatpush3.msra.mxu1 %v1590_v18  ;;  %2768 = vmatprep.mubr.msk.f32.mxu1 %vm2891_vm15, %v2890_v4 }
 0x564   :  { %2750 = vmatmul.mubr.msk.f32.vlgmr.msra.gmra.mxu0 %vm1608_vm2, %v1573_v62  ;;  %2769 = vmatmul.mubr.msk.f32.vlgmr.msra.gmra.mxu1 %vm1608_vm2, %v1826_v19  ;;  %v2017_v62 = vld [vmem:[%s3952_s13 + $0x8] sm:$0xff]  ;;  %s2138_s13 = sshll.u32 %s2892_s12, 4  ;;  %s2139_s13 = int_to_ptr.vmem [resolvable:$true] %s2138_s13 }
 0x565   :  { %2771 = vmatprep.subr.mxu0 %v2890_v4  ;;  %2801 = vmatprep.mubr.msk.f32.mxu0 %vm2891_vm15, %v2890_v4  ;;  %s2868_s14 = scalar_lea.vmem %s2139_s13, 32  ;;  %p2873_p1 = scmp.lt.s32.totalorder %s2139_s13, %s2139_s13 }
 0x566   :  { %2804 = vmatprep.subr.mxu1 %v2890_v4  ;;  %2826 = vmatprep.mubr.msk.f32.mxu1 %vm2891_vm15, %v2890_v4  ;;  %p2869_p0 = scmp.ne.s32.totalorder %s2139_s13, %s2868_s14  ;;  %p2874_p2 = scmp.lt.s32.totalorder %s2868_s14, %s2868_s14 }
 0x567   :  { %2772 = vmatpush3.msra.mxu0 %v1928_v20  ;;  %2805 = vmatpush3.msk.msra.mxu1 %vm130_vm1, %v2026_v53  ;;  %vm2034_vm1 = vcmask 687104  }
 0x568   :  { %2773 = vmatprep.subr.mxu0 %v2890_v4  ;;  %2806 = vmatprep.subr.mxu1 %v2890_v4  ;;  %p2875_p3 = por %p2874_p2, %p2873_p1 }
 0x569   :  { %2774 = vmatpush3.msra.mxu0 %v1927_v21  ;;  %2807 = vmatpush3.msra.mxu1 %v2025_v54 }
 0x56a   :  { %2775 = vmatprep.subr.mxu0 %v2890_v4  ;;  %2808 = vmatprep.subr.mxu1 %v2890_v4  ;;  %p2876_p4 = pnand %p2875_p3, %p2869_p0 }
 0x56b   :  { %2776 = vmatpush3.msra.mxu0 %v1926_v22  ;;  %2809 = vmatpush3.msra.mxu1 %v2024_v55 }
 0x56c   :  { %2777 = vmatprep.subr.mxu0 %v2890_v4  ;;  %2810 = vmatprep.subr.mxu1 %v2890_v4 }
 0x56d   :  { %2778 = vmatpush3.msra.mxu0 %v1925_v23  ;;  %2811 = vmatpush3.msra.mxu1 %v2023_v56 }
 0x56e   :  { %2779 = vmatprep.subr.mxu0 %v2890_v4  ;;  %2812 = vmatprep.subr.mxu1 %v2890_v4 }
 0x56f   :  { %2780 = vmatpush3.msra.mxu0 %v1924_v24  ;;  %2813 = vmatpush3.msra.mxu1 %v2022_v57 }
 0x570   :  { %2781 = vmatprep.subr.mxu0 %v2890_v4  ;;  %2814 = vmatprep.subr.mxu1 %v2890_v4 }
 0x571   :  { %2782 = vmatpush3.msra.mxu0 %v1923_v25  ;;  %2815 = vmatpush3.msra.mxu1 %v2021_v58 }
 0x572   :  { %2783 = vmatprep.subr.mxu0 %v2890_v4  ;;  %2816 = vmatprep.subr.mxu1 %v2890_v4 }
 0x573   :  { %2784 = vmatpush3.msra.mxu0 %v1922_v26  ;;  %2817 = vmatpush3.msra.mxu1 %v2020_v59 }
 0x574   :  { %2785 = vmatprep.subr.mxu0 %v2890_v4  ;;  %2818 = vmatprep.subr.mxu1 %v2890_v4 }
 0x575   :  { %2786 = vmatpush3.msra.mxu0 %v1921_v27  ;;  %2819 = vmatpush3.msra.mxu1 %v2019_v60 }
 0x576   :  { %2787 = vmatprep.subr.mxu0 %v2890_v4  ;;  %2820 = vmatprep.subr.mxu1 %v2890_v4 }
 0x577   :  { %2788 = vmatpush3.msra.mxu0 %v1920_v28  ;;  %2821 = vmatpush3.msra.mxu1 %v2018_v61 }
 0x578   :  { %2789 = vmatprep.subr.mxu0 %v2890_v4  ;;  %2822 = vmatprep.subr.mxu1 %v2890_v4 }
 0x579   :  { %2790 = vmatpush3.msra.mxu0 %v1919_v29  ;;  %2823 = vmatpush3.msra.mxu1 %v2017_v62 }
 0x57a   :  { %2791 = vmatprep.subr.mxu0 %v2890_v4  ;;  %2824 = vmatprep.subr.mxu1 %v2890_v4 }
 0x57b   :  { %2792 = vmatpush3.msra.mxu0 %v1918_v30  ;;  %2825 = vmatpush3.msra.mxu1 %v2016_v63 }
 0x57c   :  { %2793 = vmatprep.subr.mxu0 %v2890_v4 }
 0x57d   :  { %2794 = vmatpush3.msra.mxu0 %v1917_v31 }
 0x57e   :  { %2795 = vmatprep.subr.mxu0 %v2890_v4 }
 0x57f   :  { %2796 = vmatpush3.msra.mxu0 %v1916_v32 }
 0x580   :  { %2797 = vmatprep.subr.mxu0 %v2890_v4 }
 0x581   :  { %2798 = vmatpush3.msra.mxu0 %v1915_v33 }
 0x582   :  { %2799 = vmatprep.subr.mxu0 %v2890_v4 }
 0x583   :  { %2800 = vmatpush3.msra.mxu0 %v1914_v34 }
 0x613   :  { %v1677_v35 = vpop.f32.mrf.mxu0  ;;  %v1750_v36 = vpop.f32.mrf.mxu1 }
 0x615   :  { %v2713_v37 = vpop.f32.mrf.mxu0  ;;  %v2732_v38 = vpop.f32.mrf.mxu1 }
 0x624   :  { %v1822_v39 = vpop.f32.mrf.mxu0  ;;  %v1895_v40 = vpop.f32.mrf.mxu1 }
 0x625   :  { %v1823_v41 = vadd.f32 %v1822_v39, %v1677_v35  ;;  %v1896_v42 = vadd.f32 %v1895_v40, %v1750_v36 }
 0x626   :  { %v2751_v44 = vpop.f32.mrf.mxu0  ;;  %v2770_v45 = vpop.f32.mrf.mxu1 }
 0x627   :  { %v1899_v46 = vadd.f32 %v1896_v42, %v1823_v41 }
 0x629   :  { %v1907_v47 = vadd.f32 %v2277_v43, %v1899_v46 }
 0x62b   :  { %v1909_v48 = vmin.f32 %v1907_v47, 0.0  ;;  %vm1908_vm9 = vcmp.gt.f32.partialorder %v1907_v47, 0.0 }
 0x62d   :  { %v1910_v49 = vmul.f32 1.442695, %v1909_v48 }
 0x62f   :  { %2860 = vpow2.f32 %v1910_v49 }
 0x63c   :  { %v2861_v50 = vpop.eup %2860 }
 0x63d   :  { %v2278_v51 = vadd.f32 -1.0, %v2861_v50 }
 0x63f   :  { %v1913_v52 = vsel %vm1908_vm9, %v1907_v47, %v2278_v51 }
 0x640   :  { %2802 = vmatmul.mubr.msk.f32.vlgmr.msra.gmra.mxu0 %vm1936_vm8, %v1913_v52 }
 0x700   :  { %v2006_v1 = vpop.f32.mrf.mxu0 }
 0x701   :  { %v2007_v2 = vadd.f32 %v2279_v0, %v2006_v1 }
 0x702   :  { %v2803_v3 = vpop.f32.mrf.mxu0 }
 0x703   :  { %v2011_v5 = vmin.f32 %v2007_v2, 0.0  ;;  %vm2010_vm10 = vcmp.gt.f32.partialorder %v2007_v2, 0.0 }
 0x705   :  { %v2012_v6 = vmul.f32 1.442695, %v2011_v5 }
 0x707   :  { %2862 = vpow2.f32 %v2012_v6 }
 0x714   :  { %v2863_v7 = vpop.eup %2862 }
 0x715   :  { %v2281_v8 = vadd.f32 -1.0, %v2863_v7 }
 0x717   :  { %v2015_v4 = vsel %vm2010_vm10, %v2007_v2, %v2281_v8 }
 0x718   :  { %2827 = vmatmul.mubr.msk.f32.vlgmr.msra.gmra.mxu1 %vm2034_vm1, %v2015_v4 }
 0x7d8   :  { %v2107_v10 = vpop.f32.mrf.mxu1 }
 0x7d9   :  { %v2108_v11 = vadd.f32 %v2282_v9, %v2107_v10 }
 0x7da   :  { %v2828_v12 = vpop.f32.mrf.mxu1 }
 0x7db   :  { %v2112_v13 = vsel %vm2111_vm11, %v2108_v11, -inf }
 0x7dc   :  { %v2113_v14 = vrot.slane %v2112_v13, 4 }
 0x7de   :  { %v2114_v15 = vmax.f32 %v2112_v13, %v2113_v14 }
 0x7e0   :  { %v2115_v16 = vrot.slane %v2114_v15, 2 }
 0x7e2   :  { %v2116_v17 = vmax.f32 %v2114_v15, %v2115_v16 }
 0x7e4   :  { %v2117_v18 = vrot.slane %v2116_v17, 1 }
 0x7e6   :  { %v2118_v19 = vmax.f32 %v2116_v17, %v2117_v18 }
 0x7e8   :  { %v2119_v20 = vsub.f32 %v2108_v11, %v2118_v19 }
 0x7ea   :  { %v2120_v21 = vmul.f32 1.442695, %v2119_v20 }
 0x7ec   :  { %2864 = vpow2.f32 %v2120_v21 }
 0x7f9   :  { %v2865_v22 = vpop.eup %2864 }
 0x7fa   :  { %v2122_v23 = vsel %vm2111_vm11, %v2865_v22, 0.0 }
 0x7fb   :  { %v2123_v24 = vrot.slane %v2122_v23, 4 }
 0x7fd   :  { %v2124_v25 = vadd.f32 %v2123_v24, %v2122_v23 }
 0x7ff   :  { %v2125_v26 = vrot.slane %v2124_v25, 2 }
 0x801   :  { %v2126_v27 = vadd.f32 %v2125_v26, %v2124_v25 }
 0x803   :  { %v2127_v28 = vrot.slane %v2126_v27, 1 }
 0x805   :  { %v2128_v29 = vadd.f32 %v2127_v28, %v2126_v27 }
 0x807   :  { %2866 = vrcp.f32 %v2128_v29 }
 0x814   :  { %v2867_v30 = vpop.eup %2866 }
 0x815   :  { %v2130_v31 = vmul.f32 %v2867_v30, %v2865_v22 }
 0x817   :  { %2131 = vst.msk [vmem:[#allocation2] sm:$0x3] %vm2111_vm11, %v2130_v31 }
 0x818   :  { %2879 = shalt.err (!%p2876_p4)
}
 0x819   :  { %2141 = dma.vmem_to_hbm [thread:$0]  %s2139_s13, 32, %s3954_s15, [#allocation3]  }
 0x81a   :  { %2888 = dma.done.wait [#allocation3], 32  }
 0x81b   :  { %2889 = vsyncadd [#allocation3], 4294967264 }
 0x81c   :  { %2145 = vsyncpa [#allocation3], 1 }

</bundles_post_ra>
